<compile_context>
chip_gen: v7x
topology: tpu7x:2x2x1
jax: 0.10.0
libtpu: 0.0.40
codegen_flags: <defaults>
</compile_context>

<pallas_src>
import jax
import jax.numpy as jnp
from jax import lax
from jax.experimental import pallas as pl
from jax.experimental.pallas import tpu as pltpu


def _round_up(x, m):
    return (x + m - 1) // m * m


def _sigmoid(z):
    # tanh-based sigmoid: one EUP transcendental, no divide (frees VPU/EUP slots).
    return 0.5 * jnp.tanh(0.5 * z) + 0.5


def _lstm_kernel(tmax_ref, x_ref, wih_ref, whh_ref, b_ref, len_ref, o_ref,
                 gx_scr, h_scr, c_scr):
    """One (batch_tile, time_tile) grid step of the LSTM recurrence.

    tmax_ref : (nB,) int32 SMEM   scalar-prefetched max sequence length per batch tile
    x_ref    : (TT, TB, D) bf16   time-major input tile (streamed)
    wih      : (D, 4*Hp) bf16     input->gates weights (VMEM-resident, constant index_map)
    whh      : (Hp, 4*Hp) bf16    hidden->gates weights (VMEM-resident)
    b        : (1, 4*Hp) f32      combined bias b_ih + b_hh (VMEM-resident)
    len      : (TB, 1) int32      per-row sequence lengths
    o_ref    : (TT, TB, Hp) f32   output tile: h_t, zero-masked for t >= length
    gx_scr   : (TT*TB, 4*Hp) f32  hoisted input-projection gates for the whole tile
    h_scr, c_scr : (TB, Hp) f32   recurrent state, carried across the time grid axis
    """
    TT, TB, D = x_ref.shape
    Hp = h_scr.shape[1]
    b_tile = pl.program_id(0)
    t_tile = pl.program_id(1)

    # Reset the carry at the start of each batch tile's time sweep.
    @pl.when(t_tile == 0)
    def _():
        h_scr[...] = jnp.zeros_like(h_scr)
        c_scr[...] = jnp.zeros_like(c_scr)

    t_base = t_tile * TT
    tile_active = t_base < tmax_ref[b_tile]

    @pl.when(jnp.logical_not(tile_active))
    def _():
        # Every row of this batch tile is already past its sequence end: just emit zeros
        # (pad_packed_sequence semantics), skip the recurrence entirely.
        o_ref[...] = jnp.zeros_like(o_ref)

    @pl.when(tile_active)
    def _():
        lengths = len_ref[...]                                   # (TB, 1) int32

        # ---- Hoisted input projection: one big MXU matmul for all TT timesteps ----
        x_flat = x_ref[...].reshape(TT * TB, D)                  # bf16
        gx_scr[...] = (
            jnp.dot(x_flat, wih_ref[...], preferred_element_type=jnp.float32)
            + b_ref[...]                                         # bias folded in once
        )

        # ---- Serial recurrence: only h @ W_hh + elementwise per step ----
        def step(s, carry):
            row = pl.multiple_of(s * TB, 8)
            g = gx_scr[pl.ds(row, TB), :] + jnp.dot(
                h_scr[...].astype(whh_ref.dtype), whh_ref[...],
                preferred_element_type=jnp.float32)              # (TB, 4*Hp) f32
            i_g = _sigmoid(g[:, 0 * Hp:1 * Hp])
            f_g = _sigmoid(g[:, 1 * Hp:2 * Hp])
            g_g = jnp.tanh(g[:, 2 * Hp:3 * Hp])
            o_g = _sigmoid(g[:, 3 * Hp:4 * Hp])
            c_new = f_g * c_scr[...] + i_g * g_g
            h_new = o_g * jnp.tanh(c_new)
            c_scr[...] = c_new
            h_scr[...] = h_new
            mask = (t_base + s) < lengths                        # (TB, 1) bool
            o_ref[s] = jnp.where(mask, h_new, 0.0).astype(o_ref.dtype)
            return carry

        lax.fori_loop(0, TT, step, 0, unroll=True)


def _tile_vmem_bytes(TB, TT, D, Hp, op_bytes):
    x_tiles = 2 * TT * TB * D * op_bytes                # streamed x, double-buffered
    out_tiles = 2 * TT * TB * Hp * 4                    # streamed out, double-buffered
    weights = 2 * (D + Hp) * 4 * Hp * op_bytes + 2 * 4 * Hp * 4 + 2 * TB * 4
    scratch = TT * TB * 4 * Hp * 4 + 2 * TB * Hp * 4    # gx + h + c
    return x_tiles + out_tiles + weights + scratch


def time_series_encoder(x, lengths, w_ih, w_hh, b_ih, b_hh, *,
                        batch_tile=128, time_tile=16,
                        operand_dtype=jnp.bfloat16,
                        vmem_budget_bytes=40 << 20):
    """LSTM forward matching TimeSeriesEncoder.forward(x, lengths).

    x       : (B, T, D) float32 padded batch
    lengths : (B,) int, number of valid timesteps per row
    w_ih    : (4H, D), w_hh: (4H, H), b_ih/b_hh: (4H,)  — PyTorch nn.LSTM layout (gates i,f,g,o)
    returns : (B, T, H) float32, zeroed for t >= lengths[b]
    """
    B, T, D = x.shape
    H = w_hh.shape[1]
    assert w_ih.shape == (4 * H, D) and w_hh.shape == (4 * H, H)

    f32 = jnp.float32
    op_bytes = jnp.dtype(operand_dtype).itemsize
    Hp = _round_up(H, 128)                      # lane-dense hidden dim (output + gate blocks)

    # Tile selection under a cross-generation VMEM budget (v7x has only 64 MiB physical).
    TB = min(_round_up(B, 8), batch_tile)
    TT = max(1, min(T, time_tile))
    while _tile_vmem_bytes(TB, TT, D, Hp, op_bytes) > vmem_budget_bytes and TT > 8:
        TT = max(8, TT // 2)
    while _tile_vmem_bytes(TB, TT, D, Hp, op_bytes) > vmem_budget_bytes and TB > 8:
        TB = max(8, _round_up(TB // 2, 8))
    Bp = _round_up(B, TB)
    Tp = _round_up(T, TT)
    nB, nT = Bp // TB, Tp // TT

    def pad_gate_cols(w):                        # (rows, 4H) -> (rows, 4Hp), per-gate zero pad
        rows = w.shape[0]
        out = jnp.zeros((rows, 4 * Hp), f32)
        for k in range(4):
            out = out.at[:, k * Hp:k * Hp + H].set(w[:, k * H:(k + 1) * H])
        return out

    # Weights: bf16 operands, gate blocks padded to Hp (padded lanes stay exactly 0 through
    # the recurrence). W_hh rows padded to Hp to match padded h.
    wih_p = pad_gate_cols(w_ih.T.astype(f32)).astype(operand_dtype)            # (D, 4Hp)
    whh_p = (jnp.zeros((Hp, 4 * Hp), f32)
             .at[:H, :].set(pad_gate_cols(w_hh.T.astype(f32)))
             .astype(operand_dtype))                                           # (Hp, 4Hp)
    b_p = pad_gate_cols((b_ih + b_hh).astype(f32).reshape(1, 4 * H))           # (1, 4Hp) f32

    # Time-major input; NO feature-dim padding (block dim == full array dim), cast fused into
    # the single staging copy. Only batch/time are padded to tile multiples.
    x_tm = jnp.transpose(x, (1, 0, 2)).astype(operand_dtype)                   # (T, B, D)
    x_p = jnp.pad(x_tm, ((0, Tp - T), (0, Bp - B), (0, 0)))                    # (Tp, Bp, D)

    len_full = jnp.zeros((Bp,), jnp.int32).at[:B].set(lengths.astype(jnp.int32))
    len_p = len_full.reshape(Bp, 1)
    tile_max = jnp.max(len_full.reshape(nB, TB), axis=1).astype(jnp.int32)     # (nB,)

    vmem_limit = int(min(max(_tile_vmem_bytes(TB, TT, D, Hp, op_bytes) * 1.25 + (2 << 20),
                             16 << 20), 64 << 20))

    flops = 2 * Bp * Tp * (D + Hp) * 4 * Hp
    transcendentals = 5 * Bp * Tp * Hp
    bytes_accessed = (Tp * Bp * D * op_bytes + Tp * Bp * Hp * 4
                      + (D + Hp) * 4 * Hp * op_bytes + 4 * Hp * 4 + Bp * 8)

    grid_spec = pltpu.PrefetchScalarGridSpec(
        num_scalar_prefetch=1,                 # tile_max -> SMEM, available to index_maps/kernel
        grid=(nB, nT),                         # time MUST stay the last (sequential) axis
        in_specs=[
            pl.BlockSpec((TT, TB, D), lambda i, t, tm: (t, i, 0)),    # streamed x tile
            pl.BlockSpec((D, 4 * Hp), lambda i, t, tm: (0, 0)),       # resident W_ih^T (bf16)
            pl.BlockSpec((Hp, 4 * Hp), lambda i, t, tm: (0, 0)),      # resident W_hh^T (bf16)
            pl.BlockSpec((1, 4 * Hp), lambda i, t, tm: (0, 0)),       # resident bias (f32)
            pl.BlockSpec((TB, 1), lambda i, t, tm: (i, 0)),           # per-row lengths
        ],
        out_specs=pl.BlockSpec((TT, TB, Hp), lambda i, t, tm: (t, i, 0)),
        scratch_shapes=[
            pltpu.VMEM((TT * TB, 4 * Hp), jnp.float32),   # hoisted input-projection gates
            pltpu.VMEM((TB, Hp), jnp.float32),            # h carry
            pltpu.VMEM((TB, Hp), jnp.float32),            # c carry
        ],
    )

    out_p = pl.pallas_call(
        _lstm_kernel,
        out_shape=jax.ShapeDtypeStruct((Tp, Bp, Hp), f32),
        grid_spec=grid_spec,
        compiler_params=pltpu.CompilerParams(
            dimension_semantics=("parallel", "arbitrary"),
            vmem_limit_bytes=vmem_limit),
        cost_estimate=pl.CostEstimate(
            flops=flops, transcendentals=transcendentals, bytes_accessed=bytes_accessed),
    )(tile_max, x_p, wih_p, whh_p, b_p, len_p)

    # Back to batch-first, strip batch/time/hidden padding.
    return jnp.transpose(out_p, (1, 0, 2))[:B, :T, :H]


if __name__ == "__main__":
    key = jax.random.PRNGKey(0)
    k_x, k_wih, k_whh, k_bih, k_bhh = jax.random.split(key, 5)

    batch, seq_len, input_dim, hidden_dim = 2, 8, 16, 32

    x = jax.random.normal(k_x, (batch, seq_len, input_dim), dtype=jnp.float32)
    lengths = jnp.array([8, 5], dtype=jnp.int32)
    # Zero out padded timesteps, as a padded batch from a collate_fn would be.
    t_idx = jnp.arange(seq_len)[None, :, None]
    x = jnp.where(t_idx < lengths[:, None, None], x, 0.0)

    scale = 1.0 / float(jnp.sqrt(jnp.float32(hidden_dim)))   # nn.LSTM default init range
    w_ih = jax.random.uniform(k_wih, (4 * hidden_dim, input_dim), jnp.float32, -scale, scale)
    w_hh = jax.random.uniform(k_whh, (4 * hidden_dim, hidden_dim), jnp.float32, -scale, scale)
    b_ih = jax.random.uniform(k_bih, (4 * hidden_dim,), jnp.float32, -scale, scale)
    b_hh = jax.random.uniform(k_bhh, (4 * hidden_dim,), jnp.float32, -scale, scale)

    out = time_series_encoder(x, lengths, w_ih, w_hh, b_ih, b_hh)
    out = jax.block_until_ready(out)
    assert out.shape == (batch, seq_len, hidden_dim)

    # Pure-JAX f32 reference with identical semantics (pack/pad == zero-masked padded output).
    def reference(x, lengths, w_ih, w_hh, b_ih, b_hh):
        B, T, D = x.shape
        Hh = w_hh.shape[1]
        h = jnp.zeros((B, Hh), jnp.float32)
        c = jnp.zeros((B, Hh), jnp.float32)
        outs = []
        for t in range(T):
            gates = x[:, t, :] @ w_ih.T + b_ih + h @ w_hh.T + b_hh
            i_g = 1.0 / (1.0 + jnp.exp(-gates[:, 0 * Hh:1 * Hh]))
            f_g = 1.0 / (1.0 + jnp.exp(-gates[:, 1 * Hh:2 * Hh]))
            g_g = jnp.tanh(gates[:, 2 * Hh:3 * Hh])
            o_g = 1.0 / (1.0 + jnp.exp(-gates[:, 3 * Hh:4 * Hh]))
            c = f_g * c + i_g * g_g
            h = o_g * jnp.tanh(c)
            outs.append(jnp.where((t < lengths)[:, None], h, 0.0))
        return jnp.stack(outs, axis=1)

    ref = reference(x, lengths, w_ih, w_hh, b_ih, b_hh)
    max_err = float(jnp.max(jnp.abs(out - ref)))
    # bf16 matmul operands with f32 accumulation: allow bf16-level tolerance vs. the f32 reference.
    assert jnp.allclose(out, ref, atol=2e-2, rtol=2e-2), max_err
    # Padded positions are exactly zero, like pad_packed_sequence.
    pad_mask = jnp.arange(seq_len)[None, :, None] >= lengths[:, None, None]
    assert bool(jnp.all(jnp.where(pad_mask, jnp.abs(out), 0.0) == 0.0))

    print("KERNEL_OK")
</pallas_src>

<mosaic_0001>
module attributes {stable_mosaic.version = 11 : i64} {
  func.func @_lstm_kernel(%arg0: i32, %arg1: i32, %arg2: memref<1xi32, #tpu.memory_space<smem>>, %arg3: memref<8x8x16xbf16, #tpu.memory_space<vmem>>, %arg4: memref<16x512xbf16, #tpu.memory_space<vmem>>, %arg5: memref<128x512xbf16, #tpu.memory_space<vmem>>, %arg6: memref<1x512xf32, #tpu.memory_space<vmem>>, %arg7: memref<8x1xi32, #tpu.memory_space<vmem>>, %arg8: memref<8x8x128xf32, #tpu.memory_space<vmem>>, %arg9: memref<64x512xf32, #tpu.memory_space<vmem>>, %arg10: memref<8x128xf32, #tpu.memory_space<vmem>>, %arg11: memref<8x128xf32, #tpu.memory_space<vmem>>) attributes {dimension_semantics = [#tpu.dimension_semantics<parallel>, #tpu.dimension_semantics<arbitrary>], iteration_bounds = array<i64: 1, 1>, scalar_prefetch = 1 : i64, scratch_operands = 3 : i64, tpu.core_type = #tpu.core_type<tc>, window_params = [{transform_indices = @transform_0, window_bounds = array<i64: 8, 8, 16>}, {pipeline_mode = #tpu.pipeline_mode<synchronous>, transform_indices = @transform_1, window_bounds = array<i64: 16, 512>}, {pipeline_mode = #tpu.pipeline_mode<synchronous>, transform_indices = @transform_2, window_bounds = array<i64: 128, 512>}, {pipeline_mode = #tpu.pipeline_mode<synchronous>, transform_indices = @transform_3, window_bounds = array<i64: 1, 512>}, {transform_indices = @transform_4, window_bounds = array<i64: 8, 1>}, {transform_indices = @transform_5, window_bounds = array<i64: 8, 8, 128>}]} {
    %c0_i32 = arith.constant 0 : i32
    %0 = arith.cmpi eq, %arg1, %c0_i32 : i32
    %1 = arith.extui %0 : i1 to i32
    %c0_i32_0 = arith.constant 0 : i32
    %2 = arith.cmpi ne, %1, %c0_i32_0 : i32
    scf.if %2 {
      %cst = arith.constant 0.000000e+00 : f32
      %12 = vector.broadcast %cst : f32 to vector<8x128xf32>
      %c0 = arith.constant 0 : index
      %c0_3 = arith.constant 0 : index
      %13 = vector.load %arg10[%c0, %c0_3] : memref<8x128xf32, #tpu.memory_space<vmem>>, vector<8x128xf32>
      tpu.vector_store %arg10[%c0, %c0_3], %12 {strides = array<i32>} : memref<8x128xf32, #tpu.memory_space<vmem>>, vector<8x128xf32>,
      %cst_4 = arith.constant 0.000000e+00 : f32
      %14 = vector.broadcast %cst_4 : f32 to vector<8x128xf32>
      %c0_5 = arith.constant 0 : index
      %c0_6 = arith.constant 0 : index
      %15 = vector.load %arg11[%c0_5, %c0_6] : memref<8x128xf32, #tpu.memory_space<vmem>>, vector<8x128xf32>
      tpu.vector_store %arg11[%c0_5, %c0_6], %14 {strides = array<i32>} : memref<8x128xf32, #tpu.memory_space<vmem>>, vector<8x128xf32>,
    } else {
    }
    %c8_i32 = arith.constant 8 : i32
    %3 = arith.muli %arg1, %c8_i32 : i32
    %4 = arith.index_cast %arg0 : i32 to index
    %5 = memref.load %arg2[%4] : memref<1xi32, #tpu.memory_space<smem>>
    %6 = arith.cmpi slt, %3, %5 : i32
    %true = arith.constant true
    %7 = arith.xori %6, %true : i1
    %8 = arith.extui %7 : i1 to i32
    %c0_i32_1 = arith.constant 0 : i32
    %9 = arith.cmpi ne, %8, %c0_i32_1 : i32
    scf.if %9 {
      %cst = arith.constant 0.000000e+00 : f32
      %12 = vector.broadcast %cst : f32 to vector<8x8x128xf32>
      %c0 = arith.constant 0 : index
      %c0_3 = arith.constant 0 : index
      %c0_4 = arith.constant 0 : index
      %13 = vector.load %arg8[%c0, %c0_3, %c0_4] : memref<8x8x128xf32, #tpu.memory_space<vmem>>, vector<8x8x128xf32>
      tpu.vector_store %arg8[%c0, %c0_3, %c0_4], %12 {strides = array<i32>} : memref<8x8x128xf32, #tpu.memory_space<vmem>>, vector<8x8x128xf32>,
    } else {
    }
    %10 = arith.extui %6 : i1 to i32
    %c0_i32_2 = arith.constant 0 : i32
    %11 = arith.cmpi ne, %10, %c0_i32_2 : i32
    scf.if %11 {
      %c0 = arith.constant 0 : index
      %c0_3 = arith.constant 0 : index
      %12 = vector.load %arg7[%c0, %c0_3] : memref<8x1xi32, #tpu.memory_space<vmem>>, vector<8x1xi32>
      %c0_4 = arith.constant 0 : index
      %c0_5 = arith.constant 0 : index
      %c0_6 = arith.constant 0 : index
      %13 = vector.load %arg3[%c0_4, %c0_5, %c0_6] : memref<8x8x16xbf16, #tpu.memory_space<vmem>>, vector<8x8x16xbf16>
      %14 = vector.shape_cast %13 : vector<8x8x16xbf16> to vector<64x16xbf16>
      %c0_7 = arith.constant 0 : index
      %c0_8 = arith.constant 0 : index
      %15 = vector.load %arg4[%c0_7, %c0_8] : memref<16x512xbf16, #tpu.memory_space<vmem>>, vector<16x512xbf16>
      %cst = arith.constant dense<0.000000e+00> : vector<64x512xf32>
      %16 = tpu.matmul %14, %15, %cst {dimension_numbers = #tpu.dot_dimension_numbers<[1], [0], [0], [1], [0, 0, 1, 1], [], []>} : vector<64x16xbf16>, vector<16x512xbf16>, vector<64x512xf32> -> vector<64x512xf32>
      %c0_9 = arith.constant 0 : index
      %c0_10 = arith.constant 0 : index
      %17 = vector.load %arg6[%c0_9, %c0_10] : memref<1x512xf32, #tpu.memory_space<vmem>>, vector<1x512xf32>
      %18 = vector.broadcast %17 : vector<1x512xf32> to vector<64x512xf32>
      %19 = arith.addf %16, %18 : vector<64x512xf32>
      %c0_11 = arith.constant 0 : index
      %c0_12 = arith.constant 0 : index
      %20 = vector.load %arg9[%c0_11, %c0_12] : memref<64x512xf32, #tpu.memory_space<vmem>>, vector<64x512xf32>
      tpu.vector_store %arg9[%c0_11, %c0_12], %19 {strides = array<i32>} : memref<64x512xf32, #tpu.memory_space<vmem>>, vector<64x512xf32>,
      %c0_i32_13 = arith.constant 0 : i32
      %c8_i32_14 = arith.constant 8 : i32
      %21 = arith.muli %c0_i32_13, %c8_i32_14 : i32
      %22 = tpu.assume_multiple %21, 8 : i32
      %23 = arith.index_cast %22 : i32 to index
      %c0_15 = arith.constant 0 : index
      %24 = vector.load %arg9[%23, %c0_15] : memref<64x512xf32, #tpu.memory_space<vmem>>, vector<8x512xf32>
      %c0_16 = arith.constant 0 : index
      %c0_17 = arith.constant 0 : index
      %25 = vector.load %arg10[%c0_16, %c0_17] : memref<8x128xf32, #tpu.memory_space<vmem>>, vector<8x128xf32>
      %26 = arith.truncf %25 : vector<8x128xf32> to vector<8x128xbf16>
      %c0_18 = arith.constant 0 : index
      %c0_19 = arith.constant 0 : index
      %27 = vector.load %arg5[%c0_18, %c0_19] : memref<128x512xbf16, #tpu.memory_space<vmem>>, vector<128x512xbf16>
      %cst_20 = arith.constant dense<0.000000e+00> : vector<8x512xf32>
      %28 = tpu.matmul %26, %27, %cst_20 {dimension_numbers = #tpu.dot_dimension_numbers<[1], [0], [0], [1], [0, 0, 1, 1], [], []>} : vector<8x128xbf16>, vector<128x512xbf16>, vector<8x512xf32> -> vector<8x512xf32>
      %29 = arith.addf %24, %28 : vector<8x512xf32>
      %30 = vector.extract_strided_slice %29 {offsets = [0, 0], sizes = [8, 128], strides = [1, 1]} : vector<8x512xf32> to vector<8x128xf32>
      %cst_21 = arith.constant 5.000000e-01 : f32
      %31 = vector.broadcast %cst_21 : f32 to vector<8x128xf32>
      %32 = arith.mulf %31, %30 : vector<8x128xf32>
      %33 = math.tanh %32 : vector<8x128xf32>
      %cst_22 = arith.constant 5.000000e-01 : f32
      %34 = vector.broadcast %cst_22 : f32 to vector<8x128xf32>
      %35 = arith.mulf %34, %33 : vector<8x128xf32>
      %cst_23 = arith.constant 5.000000e-01 : f32
      %36 = vector.broadcast %cst_23 : f32 to vector<8x128xf32>
      %37 = arith.addf %35, %36 : vector<8x128xf32>
      %38 = vector.extract_strided_slice %29 {offsets = [0, 128], sizes = [8, 128], strides = [1, 1]} : vector<8x512xf32> to vector<8x128xf32>
      %cst_24 = arith.constant 5.000000e-01 : f32
      %39 = vector.broadcast %cst_24 : f32 to vector<8x128xf32>
      %40 = arith.mulf %39, %38 : vector<8x128xf32>
      %41 = math.tanh %40 : vector<8x128xf32>
      %cst_25 = arith.constant 5.000000e-01 : f32
      %42 = vector.broadcast %cst_25 : f32 to vector<8x128xf32>
      %43 = arith.mulf %42, %41 : vector<8x128xf32>
      %cst_26 = arith.constant 5.000000e-01 : f32
      %44 = vector.broadcast %cst_26 : f32 to vector<8x128xf32>
      %45 = arith.addf %43, %44 : vector<8x128xf32>
      %46 = vector.extract_strided_slice %29 {offsets = [0, 256], sizes = [8, 128], strides = [1, 1]} : vector<8x512xf32> to vector<8x128xf32>
      %47 = math.tanh %46 : vector<8x128xf32>
      %48 = vector.extract_strided_slice %29 {offsets = [0, 384], sizes = [8, 128], strides = [1, 1]} : vector<8x512xf32> to vector<8x128xf32>
      %cst_27 = arith.constant 5.000000e-01 : f32
      %49 = vector.broadcast %cst_27 : f32 to vector<8x128xf32>
      %50 = arith.mulf %49, %48 : vector<8x128xf32>
      %51 = math.tanh %50 : vector<8x128xf32>
      %cst_28 = arith.constant 5.000000e-01 : f32
      %52 = vector.broadcast %cst_28 : f32 to vector<8x128xf32>
      %53 = arith.mulf %52, %51 : vector<8x128xf32>
      %cst_29 = arith.constant 5.000000e-01 : f32
      %54 = vector.broadcast %cst_29 : f32 to vector<8x128xf32>
      %55 = arith.addf %53, %54 : vector<8x128xf32>
      %c0_30 = arith.constant 0 : index
      %c0_31 = arith.constant 0 : index
      %56 = vector.load %arg11[%c0_30, %c0_31] : memref<8x128xf32, #tpu.memory_space<vmem>>, vector<8x128xf32>
      %57 = arith.mulf %45, %56 : vector<8x128xf32>
      %58 = arith.mulf %37, %47 : vector<8x128xf32>
      %59 = arith.addf %57, %58 : vector<8x128xf32>
      %60 = math.tanh %59 : vector<8x128xf32>
      %61 = arith.mulf %55, %60 : vector<8x128xf32>
      %c0_32 = arith.constant 0 : index
      %c0_33 = arith.constant 0 : index
      %62 = vector.load %arg11[%c0_32, %c0_33] : memref<8x128xf32, #tpu.memory_space<vmem>>, vector<8x128xf32>
      tpu.vector_store %arg11[%c0_32, %c0_33], %59 {strides = array<i32>} : memref<8x128xf32, #tpu.memory_space<vmem>>, vector<8x128xf32>,
      %c0_34 = arith.constant 0 : index
      %c0_35 = arith.constant 0 : index
      %63 = vector.load %arg10[%c0_34, %c0_35] : memref<8x128xf32, #tpu.memory_space<vmem>>, vector<8x128xf32>
      tpu.vector_store %arg10[%c0_34, %c0_35], %61 {strides = array<i32>} : memref<8x128xf32, #tpu.memory_space<vmem>>, vector<8x128xf32>,
      %64 = arith.addi %3, %c0_i32_13 : i32
      %65 = vector.broadcast %64 : i32 to vector<8x1xi32>
      %66 = arith.cmpi slt, %65, %12 : vector<8x1xi32>
      %cst_36 = arith.constant 0.000000e+00 : f32
      %67 = vector.shape_cast %66 : vector<8x1xi1> to vector<8x1xi1>
      %68 = vector.broadcast %67 : vector<8x1xi1> to vector<8x128xi1>
      %69 = vector.broadcast %cst_36 : f32 to vector<8x128xf32>
      %70 = arith.select %68, %61, %69 : vector<8x128xi1>, vector<8x128xf32>
      %71 = arith.index_cast %c0_i32_13 : i32 to index
      %c0_37 = arith.constant 0 : index
      %c0_38 = arith.constant 0 : index
      %72 = vector.load %arg8[%71, %c0_37, %c0_38] : memref<8x8x128xf32, #tpu.memory_space<vmem>>, vector<1x8x128xf32>
      %73 = vector.shape_cast %72 : vector<1x8x128xf32> to vector<8x128xf32>
      %74 = vector.shape_cast %70 : vector<8x128xf32> to vector<1x8x128xf32>
      tpu.vector_store %arg8[%71, %c0_37, %c0_38], %74 {strides = array<i32>} : memref<8x8x128xf32, #tpu.memory_space<vmem>>, vector<1x8x128xf32>,
      %c1_i32 = arith.constant 1 : i32
      %c8_i32_39 = arith.constant 8 : i32
      %75 = arith.muli %c1_i32, %c8_i32_39 : i32
      %76 = tpu.assume_multiple %75, 8 : i32
      %77 = arith.index_cast %76 : i32 to index
      %c0_40 = arith.constant 0 : index
      %78 = vector.load %arg9[%77, %c0_40] : memref<64x512xf32, #tpu.memory_space<vmem>>, vector<8x512xf32>
      %c0_41 = arith.constant 0 : index
      %c0_42 = arith.constant 0 : index
      %79 = vector.load %arg10[%c0_41, %c0_42] : memref<8x128xf32, #tpu.memory_space<vmem>>, vector<8x128xf32>
      %80 = arith.truncf %79 : vector<8x128xf32> to vector<8x128xbf16>
      %c0_43 = arith.constant 0 : index
      %c0_44 = arith.constant 0 : index
      %81 = vector.load %arg5[%c0_43, %c0_44] : memref<128x512xbf16, #tpu.memory_space<vmem>>, vector<128x512xbf16>
      %cst_45 = arith.constant dense<0.000000e+00> : vector<8x512xf32>
      %82 = tpu.matmul %80, %81, %cst_45 {dimension_numbers = #tpu.dot_dimension_numbers<[1], [0], [0], [1], [0, 0, 1, 1], [], []>} : vector<8x128xbf16>, vector<128x512xbf16>, vector<8x512xf32> -> vector<8x512xf32>
      %83 = arith.addf %78, %82 : vector<8x512xf32>
      %84 = vector.extract_strided_slice %83 {offsets = [0, 0], sizes = [8, 128], strides = [1, 1]} : vector<8x512xf32> to vector<8x128xf32>
      %cst_46 = arith.constant 5.000000e-01 : f32
      %85 = vector.broadcast %cst_46 : f32 to vector<8x128xf32>
      %86 = arith.mulf %85, %84 : vector<8x128xf32>
      %87 = math.tanh %86 : vector<8x128xf32>
      %cst_47 = arith.constant 5.000000e-01 : f32
      %88 = vector.broadcast %cst_47 : f32 to vector<8x128xf32>
      %89 = arith.mulf %88, %87 : vector<8x128xf32>
      %cst_48 = arith.constant 5.000000e-01 : f32
      %90 = vector.broadcast %cst_48 : f32 to vector<8x128xf32>
      %91 = arith.addf %89, %90 : vector<8x128xf32>
      %92 = vector.extract_strided_slice %83 {offsets = [0, 128], sizes = [8, 128], strides = [1, 1]} : vector<8x512xf32> to vector<8x128xf32>
      %cst_49 = arith.constant 5.000000e-01 : f32
      %93 = vector.broadcast %cst_49 : f32 to vector<8x128xf32>
      %94 = arith.mulf %93, %92 : vector<8x128xf32>
      %95 = math.tanh %94 : vector<8x128xf32>
      %cst_50 = arith.constant 5.000000e-01 : f32
      %96 = vector.broadcast %cst_50 : f32 to vector<8x128xf32>
      %97 = arith.mulf %96, %95 : vector<8x128xf32>
      %cst_51 = arith.constant 5.000000e-01 : f32
      %98 = vector.broadcast %cst_51 : f32 to vector<8x128xf32>
      %99 = arith.addf %97, %98 : vector<8x128xf32>
      %100 = vector.extract_strided_slice %83 {offsets = [0, 256], sizes = [8, 128], strides = [1, 1]} : vector<8x512xf32> to vector<8x128xf32>
      %101 = math.tanh %100 : vector<8x128xf32>
      %102 = vector.extract_strided_slice %83 {offsets = [0, 384], sizes = [8, 128], strides = [1, 1]} : vector<8x512xf32> to vector<8x128xf32>
      %cst_52 = arith.constant 5.000000e-01 : f32
      %103 = vector.broadcast %cst_52 : f32 to vector<8x128xf32>
      %104 = arith.mulf %103, %102 : vector<8x128xf32>
      %105 = math.tanh %104 : vector<8x128xf32>
      %cst_53 = arith.constant 5.000000e-01 : f32
      %106 = vector.broadcast %cst_53 : f32 to vector<8x128xf32>
      %107 = arith.mulf %106, %105 : vector<8x128xf32>
      %cst_54 = arith.constant 5.000000e-01 : f32
      %108 = vector.broadcast %cst_54 : f32 to vector<8x128xf32>
      %109 = arith.addf %107, %108 : vector<8x128xf32>
      %c0_55 = arith.constant 0 : index
      %c0_56 = arith.constant 0 : index
      %110 = vector.load %arg11[%c0_55, %c0_56] : memref<8x128xf32, #tpu.memory_space<vmem>>, vector<8x128xf32>
      %111 = arith.mulf %99, %110 : vector<8x128xf32>
      %112 = arith.mulf %91, %101 : vector<8x128xf32>
      %113 = arith.addf %111, %112 : vector<8x128xf32>
      %114 = math.tanh %113 : vector<8x128xf32>
      %115 = arith.mulf %109, %114 : vector<8x128xf32>
      %c0_57 = arith.constant 0 : index
      %c0_58 = arith.constant 0 : index
      %116 = vector.load %arg11[%c0_57, %c0_58] : memref<8x128xf32, #tpu.memory_space<vmem>>, vector<8x128xf32>
      tpu.vector_store %arg11[%c0_57, %c0_58], %113 {strides = array<i32>} : memref<8x128xf32, #tpu.memory_space<vmem>>, vector<8x128xf32>,
      %c0_59 = arith.constant 0 : index
      %c0_60 = arith.constant 0 : index
      %117 = vector.load %arg10[%c0_59, %c0_60] : memref<8x128xf32, #tpu.memory_space<vmem>>, vector<8x128xf32>
      tpu.vector_store %arg10[%c0_59, %c0_60], %115 {strides = array<i32>} : memref<8x128xf32, #tpu.memory_space<vmem>>, vector<8x128xf32>,
      %118 = arith.addi %3, %c1_i32 : i32
      %119 = vector.broadcast %118 : i32 to vector<8x1xi32>
      %120 = arith.cmpi slt, %119, %12 : vector<8x1xi32>
      %cst_61 = arith.constant 0.000000e+00 : f32
      %121 = vector.shape_cast %120 : vector<8x1xi1> to vector<8x1xi1>
      %122 = vector.broadcast %121 : vector<8x1xi1> to vector<8x128xi1>
      %123 = vector.broadcast %cst_61 : f32 to vector<8x128xf32>
      %124 = arith.select %122, %115, %123 : vector<8x128xi1>, vector<8x128xf32>
      %125 = arith.index_cast %c1_i32 : i32 to index
      %c0_62 = arith.constant 0 : index
      %c0_63 = arith.constant 0 : index
      %126 = vector.load %arg8[%125, %c0_62, %c0_63] : memref<8x8x128xf32, #tpu.memory_space<vmem>>, vector<1x8x128xf32>
      %127 = vector.shape_cast %126 : vector<1x8x128xf32> to vector<8x128xf32>
      %128 = vector.shape_cast %124 : vector<8x128xf32> to vector<1x8x128xf32>
      tpu.vector_store %arg8[%125, %c0_62, %c0_63], %128 {strides = array<i32>} : memref<8x8x128xf32, #tpu.memory_space<vmem>>, vector<1x8x128xf32>,
      %c2_i32 = arith.constant 2 : i32
      %c8_i32_64 = arith.constant 8 : i32
      %129 = arith.muli %c2_i32, %c8_i32_64 : i32
      %130 = tpu.assume_multiple %129, 8 : i32
      %131 = arith.index_cast %130 : i32 to index
      %c0_65 = arith.constant 0 : index
      %132 = vector.load %arg9[%131, %c0_65] : memref<64x512xf32, #tpu.memory_space<vmem>>, vector<8x512xf32>
      %c0_66 = arith.constant 0 : index
      %c0_67 = arith.constant 0 : index
      %133 = vector.load %arg10[%c0_66, %c0_67] : memref<8x128xf32, #tpu.memory_space<vmem>>, vector<8x128xf32>
      %134 = arith.truncf %133 : vector<8x128xf32> to vector<8x128xbf16>
      %c0_68 = arith.constant 0 : index
      %c0_69 = arith.constant 0 : index
      %135 = vector.load %arg5[%c0_68, %c0_69] : memref<128x512xbf16, #tpu.memory_space<vmem>>, vector<128x512xbf16>
      %cst_70 = arith.constant dense<0.000000e+00> : vector<8x512xf32>
      %136 = tpu.matmul %134, %135, %cst_70 {dimension_numbers = #tpu.dot_dimension_numbers<[1], [0], [0], [1], [0, 0, 1, 1], [], []>} : vector<8x128xbf16>, vector<128x512xbf16>, vector<8x512xf32> -> vector<8x512xf32>
      %137 = arith.addf %132, %136 : vector<8x512xf32>
      %138 = vector.extract_strided_slice %137 {offsets = [0, 0], sizes = [8, 128], strides = [1, 1]} : vector<8x512xf32> to vector<8x128xf32>
      %cst_71 = arith.constant 5.000000e-01 : f32
      %139 = vector.broadcast %cst_71 : f32 to vector<8x128xf32>
      %140 = arith.mulf %139, %138 : vector<8x128xf32>
      %141 = math.tanh %140 : vector<8x128xf32>
      %cst_72 = arith.constant 5.000000e-01 : f32
      %142 = vector.broadcast %cst_72 : f32 to vector<8x128xf32>
      %143 = arith.mulf %142, %141 : vector<8x128xf32>
      %cst_73 = arith.constant 5.000000e-01 : f32
      %144 = vector.broadcast %cst_73 : f32 to vector<8x128xf32>
      %145 = arith.addf %143, %144 : vector<8x128xf32>
      %146 = vector.extract_strided_slice %137 {offsets = [0, 128], sizes = [8, 128], strides = [1, 1]} : vector<8x512xf32> to vector<8x128xf32>
      %cst_74 = arith.constant 5.000000e-01 : f32
      %147 = vector.broadcast %cst_74 : f32 to vector<8x128xf32>
      %148 = arith.mulf %147, %146 : vector<8x128xf32>
      %149 = math.tanh %148 : vector<8x128xf32>
      %cst_75 = arith.constant 5.000000e-01 : f32
      %150 = vector.broadcast %cst_75 : f32 to vector<8x128xf32>
      %151 = arith.mulf %150, %149 : vector<8x128xf32>
      %cst_76 = arith.constant 5.000000e-01 : f32
      %152 = vector.broadcast %cst_76 : f32 to vector<8x128xf32>
      %153 = arith.addf %151, %152 : vector<8x128xf32>
      %154 = vector.extract_strided_slice %137 {offsets = [0, 256], sizes = [8, 128], strides = [1, 1]} : vector<8x512xf32> to vector<8x128xf32>
      %155 = math.tanh %154 : vector<8x128xf32>
      %156 = vector.extract_strided_slice %137 {offsets = [0, 384], sizes = [8, 128], strides = [1, 1]} : vector<8x512xf32> to vector<8x128xf32>
      %cst_77 = arith.constant 5.000000e-01 : f32
      %157 = vector.broadcast %cst_77 : f32 to vector<8x128xf32>
      %158 = arith.mulf %157, %156 : vector<8x128xf32>
      %159 = math.tanh %158 : vector<8x128xf32>
      %cst_78 = arith.constant 5.000000e-01 : f32
      %160 = vector.broadcast %cst_78 : f32 to vector<8x128xf32>
      %161 = arith.mulf %160, %159 : vector<8x128xf32>
      %cst_79 = arith.constant 5.000000e-01 : f32
      %162 = vector.broadcast %cst_79 : f32 to vector<8x128xf32>
      %163 = arith.addf %161, %162 : vector<8x128xf32>
      %c0_80 = arith.constant 0 : index
      %c0_81 = arith.constant 0 : index
      %164 = vector.load %arg11[%c0_80, %c0_81] : memref<8x128xf32, #tpu.memory_space<vmem>>, vector<8x128xf32>
      %165 = arith.mulf %153, %164 : vector<8x128xf32>
      %166 = arith.mulf %145, %155 : vector<8x128xf32>
      %167 = arith.addf %165, %166 : vector<8x128xf32>
      %168 = math.tanh %167 : vector<8x128xf32>
      %169 = arith.mulf %163, %168 : vector<8x128xf32>
      %c0_82 = arith.constant 0 : index
      %c0_83 = arith.constant 0 : index
      %170 = vector.load %arg11[%c0_82, %c0_83] : memref<8x128xf32, #tpu.memory_space<vmem>>, vector<8x128xf32>
      tpu.vector_store %arg11[%c0_82, %c0_83], %167 {strides = array<i32>} : memref<8x128xf32, #tpu.memory_space<vmem>>, vector<8x128xf32>,
      %c0_84 = arith.constant 0 : index
      %c0_85 = arith.constant 0 : index
      %171 = vector.load %arg10[%c0_84, %c0_85] : memref<8x128xf32, #tpu.memory_space<vmem>>, vector<8x128xf32>
      tpu.vector_store %arg10[%c0_84, %c0_85], %169 {strides = array<i32>} : memref<8x128xf32, #tpu.memory_space<vmem>>, vector<8x128xf32>,
      %172 = arith.addi %3, %c2_i32 : i32
      %173 = vector.broadcast %172 : i32 to vector<8x1xi32>
      %174 = arith.cmpi slt, %173, %12 : vector<8x1xi32>
      %cst_86 = arith.constant 0.000000e+00 : f32
      %175 = vector.shape_cast %174 : vector<8x1xi1> to vector<8x1xi1>
      %176 = vector.broadcast %175 : vector<8x1xi1> to vector<8x128xi1>
      %177 = vector.broadcast %cst_86 : f32 to vector<8x128xf32>
      %178 = arith.select %176, %169, %177 : vector<8x128xi1>, vector<8x128xf32>
      %179 = arith.index_cast %c2_i32 : i32 to index
      %c0_87 = arith.constant 0 : index
      %c0_88 = arith.constant 0 : index
      %180 = vector.load %arg8[%179, %c0_87, %c0_88] : memref<8x8x128xf32, #tpu.memory_space<vmem>>, vector<1x8x128xf32>
      %181 = vector.shape_cast %180 : vector<1x8x128xf32> to vector<8x128xf32>
      %182 = vector.shape_cast %178 : vector<8x128xf32> to vector<1x8x128xf32>
      tpu.vector_store %arg8[%179, %c0_87, %c0_88], %182 {strides = array<i32>} : memref<8x8x128xf32, #tpu.memory_space<vmem>>, vector<1x8x128xf32>,
      %c3_i32 = arith.constant 3 : i32
      %c8_i32_89 = arith.constant 8 : i32
      %183 = arith.muli %c3_i32, %c8_i32_89 : i32
      %184 = tpu.assume_multiple %183, 8 : i32
      %185 = arith.index_cast %184 : i32 to index
      %c0_90 = arith.constant 0 : index
      %186 = vector.load %arg9[%185, %c0_90] : memref<64x512xf32, #tpu.memory_space<vmem>>, vector<8x512xf32>
      %c0_91 = arith.constant 0 : index
      %c0_92 = arith.constant 0 : index
      %187 = vector.load %arg10[%c0_91, %c0_92] : memref<8x128xf32, #tpu.memory_space<vmem>>, vector<8x128xf32>
      %188 = arith.truncf %187 : vector<8x128xf32> to vector<8x128xbf16>
      %c0_93 = arith.constant 0 : index
      %c0_94 = arith.constant 0 : index
      %189 = vector.load %arg5[%c0_93, %c0_94] : memref<128x512xbf16, #tpu.memory_space<vmem>>, vector<128x512xbf16>
      %cst_95 = arith.constant dense<0.000000e+00> : vector<8x512xf32>
      %190 = tpu.matmul %188, %189, %cst_95 {dimension_numbers = #tpu.dot_dimension_numbers<[1], [0], [0], [1], [0, 0, 1, 1], [], []>} : vector<8x128xbf16>, vector<128x512xbf16>, vector<8x512xf32> -> vector<8x512xf32>
      %191 = arith.addf %186, %190 : vector<8x512xf32>
      %192 = vector.extract_strided_slice %191 {offsets = [0, 0], sizes = [8, 128], strides = [1, 1]} : vector<8x512xf32> to vector<8x128xf32>
      %cst_96 = arith.constant 5.000000e-01 : f32
      %193 = vector.broadcast %cst_96 : f32 to vector<8x128xf32>
      %194 = arith.mulf %193, %192 : vector<8x128xf32>
      %195 = math.tanh %194 : vector<8x128xf32>
      %cst_97 = arith.constant 5.000000e-01 : f32
      %196 = vector.broadcast %cst_97 : f32 to vector<8x128xf32>
      %197 = arith.mulf %196, %195 : vector<8x128xf32>
      %cst_98 = arith.constant 5.000000e-01 : f32
      %198 = vector.broadcast %cst_98 : f32 to vector<8x128xf32>
      %199 = arith.addf %197, %198 : vector<8x128xf32>
      %200 = vector.extract_strided_slice %191 {offsets = [0, 128], sizes = [8, 128], strides = [1, 1]} : vector<8x512xf32> to vector<8x128xf32>
      %cst_99 = arith.constant 5.000000e-01 : f32
      %201 = vector.broadcast %cst_99 : f32 to vector<8x128xf32>
      %202 = arith.mulf %201, %200 : vector<8x128xf32>
      %203 = math.tanh %202 : vector<8x128xf32>
      %cst_100 = arith.constant 5.000000e-01 : f32
      %204 = vector.broadcast %cst_100 : f32 to vector<8x128xf32>
      %205 = arith.mulf %204, %203 : vector<8x128xf32>
      %cst_101 = arith.constant 5.000000e-01 : f32
      %206 = vector.broadcast %cst_101 : f32 to vector<8x128xf32>
      %207 = arith.addf %205, %206 : vector<8x128xf32>
      %208 = vector.extract_strided_slice %191 {offsets = [0, 256], sizes = [8, 128], strides = [1, 1]} : vector<8x512xf32> to vector<8x128xf32>
      %209 = math.tanh %208 : vector<8x128xf32>
      %210 = vector.extract_strided_slice %191 {offsets = [0, 384], sizes = [8, 128], strides = [1, 1]} : vector<8x512xf32> to vector<8x128xf32>
      %cst_102 = arith.constant 5.000000e-01 : f32
      %211 = vector.broadcast %cst_102 : f32 to vector<8x128xf32>
      %212 = arith.mulf %211, %210 : vector<8x128xf32>
      %213 = math.tanh %212 : vector<8x128xf32>
      %cst_103 = arith.constant 5.000000e-01 : f32
      %214 = vector.broadcast %cst_103 : f32 to vector<8x128xf32>
      %215 = arith.mulf %214, %213 : vector<8x128xf32>
      %cst_104 = arith.constant 5.000000e-01 : f32
      %216 = vector.broadcast %cst_104 : f32 to vector<8x128xf32>
      %217 = arith.addf %215, %216 : vector<8x128xf32>
      %c0_105 = arith.constant 0 : index
      %c0_106 = arith.constant 0 : index
      %218 = vector.load %arg11[%c0_105, %c0_106] : memref<8x128xf32, #tpu.memory_space<vmem>>, vector<8x128xf32>
      %219 = arith.mulf %207, %218 : vector<8x128xf32>
      %220 = arith.mulf %199, %209 : vector<8x128xf32>
      %221 = arith.addf %219, %220 : vector<8x128xf32>
      %222 = math.tanh %221 : vector<8x128xf32>
      %223 = arith.mulf %217, %222 : vector<8x128xf32>
      %c0_107 = arith.constant 0 : index
      %c0_108 = arith.constant 0 : index
      %224 = vector.load %arg11[%c0_107, %c0_108] : memref<8x128xf32, #tpu.memory_space<vmem>>, vector<8x128xf32>
      tpu.vector_store %arg11[%c0_107, %c0_108], %221 {strides = array<i32>} : memref<8x128xf32, #tpu.memory_space<vmem>>, vector<8x128xf32>,
      %c0_109 = arith.constant 0 : index
      %c0_110 = arith.constant 0 : index
      %225 = vector.load %arg10[%c0_109, %c0_110] : memref<8x128xf32, #tpu.memory_space<vmem>>, vector<8x128xf32>
      tpu.vector_store %arg10[%c0_109, %c0_110], %223 {strides = array<i32>} : memref<8x128xf32, #tpu.memory_space<vmem>>, vector<8x128xf32>,
      %226 = arith.addi %3, %c3_i32 : i32
      %227 = vector.broadcast %226 : i32 to vector<8x1xi32>
      %228 = arith.cmpi slt, %227, %12 : vector<8x1xi32>
      %cst_111 = arith.constant 0.000000e+00 : f32
      %229 = vector.shape_cast %228 : vector<8x1xi1> to vector<8x1xi1>
      %230 = vector.broadcast %229 : vector<8x1xi1> to vector<8x128xi1>
      %231 = vector.broadcast %cst_111 : f32 to vector<8x128xf32>
      %232 = arith.select %230, %223, %231 : vector<8x128xi1>, vector<8x128xf32>
      %233 = arith.index_cast %c3_i32 : i32 to index
      %c0_112 = arith.constant 0 : index
      %c0_113 = arith.constant 0 : index
      %234 = vector.load %arg8[%233, %c0_112, %c0_113] : memref<8x8x128xf32, #tpu.memory_space<vmem>>, vector<1x8x128xf32>
      %235 = vector.shape_cast %234 : vector<1x8x128xf32> to vector<8x128xf32>
      %236 = vector.shape_cast %232 : vector<8x128xf32> to vector<1x8x128xf32>
      tpu.vector_store %arg8[%233, %c0_112, %c0_113], %236 {strides = array<i32>} : memref<8x8x128xf32, #tpu.memory_space<vmem>>, vector<1x8x128xf32>,
      %c4_i32 = arith.constant 4 : i32
      %c8_i32_114 = arith.constant 8 : i32
      %237 = arith.muli %c4_i32, %c8_i32_114 : i32
      %238 = tpu.assume_multiple %237, 8 : i32
      %239 = arith.index_cast %238 : i32 to index
      %c0_115 = arith.constant 0 : index
      %240 = vector.load %arg9[%239, %c0_115] : memref<64x512xf32, #tpu.memory_space<vmem>>, vector<8x512xf32>
      %c0_116 = arith.constant 0 : index
      %c0_117 = arith.constant 0 : index
      %241 = vector.load %arg10[%c0_116, %c0_117] : memref<8x128xf32, #tpu.memory_space<vmem>>, vector<8x128xf32>
      %242 = arith.truncf %241 : vector<8x128xf32> to vector<8x128xbf16>
      %c0_118 = arith.constant 0 : index
      %c0_119 = arith.constant 0 : index
      %243 = vector.load %arg5[%c0_118, %c0_119] : memref<128x512xbf16, #tpu.memory_space<vmem>>, vector<128x512xbf16>
      %cst_120 = arith.constant dense<0.000000e+00> : vector<8x512xf32>
      %244 = tpu.matmul %242, %243, %cst_120 {dimension_numbers = #tpu.dot_dimension_numbers<[1], [0], [0], [1], [0, 0, 1, 1], [], []>} : vector<8x128xbf16>, vector<128x512xbf16>, vector<8x512xf32> -> vector<8x512xf32>
      %245 = arith.addf %240, %244 : vector<8x512xf32>
      %246 = vector.extract_strided_slice %245 {offsets = [0, 0], sizes = [8, 128], strides = [1, 1]} : vector<8x512xf32> to vector<8x128xf32>
      %cst_121 = arith.constant 5.000000e-01 : f32
      %247 = vector.broadcast %cst_121 : f32 to vector<8x128xf32>
      %248 = arith.mulf %247, %246 : vector<8x128xf32>
      %249 = math.tanh %248 : vector<8x128xf32>
      %cst_122 = arith.constant 5.000000e-01 : f32
      %250 = vector.broadcast %cst_122 : f32 to vector<8x128xf32>
      %251 = arith.mulf %250, %249 : vector<8x128xf32>
      %cst_123 = arith.constant 5.000000e-01 : f32
      %252 = vector.broadcast %cst_123 : f32 to vector<8x128xf32>
      %253 = arith.addf %251, %252 : vector<8x128xf32>
      %254 = vector.extract_strided_slice %245 {offsets = [0, 128], sizes = [8, 128], strides = [1, 1]} : vector<8x512xf32> to vector<8x128xf32>
      %cst_124 = arith.constant 5.000000e-01 : f32
      %255 = vector.broadcast %cst_124 : f32 to vector<8x128xf32>
      %256 = arith.mulf %255, %254 : vector<8x128xf32>
      %257 = math.tanh %256 : vector<8x128xf32>
      %cst_125 = arith.constant 5.000000e-01 : f32
      %258 = vector.broadcast %cst_125 : f32 to vector<8x128xf32>
      %259 = arith.mulf %258, %257 : vector<8x128xf32>
      %cst_126 = arith.constant 5.000000e-01 : f32
      %260 = vector.broadcast %cst_126 : f32 to vector<8x128xf32>
      %261 = arith.addf %259, %260 : vector<8x128xf32>
      %262 = vector.extract_strided_slice %245 {offsets = [0, 256], sizes = [8, 128], strides = [1, 1]} : vector<8x512xf32> to vector<8x128xf32>
      %263 = math.tanh %262 : vector<8x128xf32>
      %264 = vector.extract_strided_slice %245 {offsets = [0, 384], sizes = [8, 128], strides = [1, 1]} : vector<8x512xf32> to vector<8x128xf32>
      %cst_127 = arith.constant 5.000000e-01 : f32
      %265 = vector.broadcast %cst_127 : f32 to vector<8x128xf32>
      %266 = arith.mulf %265, %264 : vector<8x128xf32>
      %267 = math.tanh %266 : vector<8x128xf32>
      %cst_128 = arith.constant 5.000000e-01 : f32
      %268 = vector.broadcast %cst_128 : f32 to vector<8x128xf32>
      %269 = arith.mulf %268, %267 : vector<8x128xf32>
      %cst_129 = arith.constant 5.000000e-01 : f32
      %270 = vector.broadcast %cst_129 : f32 to vector<8x128xf32>
      %271 = arith.addf %269, %270 : vector<8x128xf32>
      %c0_130 = arith.constant 0 : index
      %c0_131 = arith.constant 0 : index
      %272 = vector.load %arg11[%c0_130, %c0_131] : memref<8x128xf32, #tpu.memory_space<vmem>>, vector<8x128xf32>
      %273 = arith.mulf %261, %272 : vector<8x128xf32>
      %274 = arith.mulf %253, %263 : vector<8x128xf32>
      %275 = arith.addf %273, %274 : vector<8x128xf32>
      %276 = math.tanh %275 : vector<8x128xf32>
      %277 = arith.mulf %271, %276 : vector<8x128xf32>
      %c0_132 = arith.constant 0 : index
      %c0_133 = arith.constant 0 : index
      %278 = vector.load %arg11[%c0_132, %c0_133] : memref<8x128xf32, #tpu.memory_space<vmem>>, vector<8x128xf32>
      tpu.vector_store %arg11[%c0_132, %c0_133], %275 {strides = array<i32>} : memref<8x128xf32, #tpu.memory_space<vmem>>, vector<8x128xf32>,
      %c0_134 = arith.constant 0 : index
      %c0_135 = arith.constant 0 : index
      %279 = vector.load %arg10[%c0_134, %c0_135] : memref<8x128xf32, #tpu.memory_space<vmem>>, vector<8x128xf32>
      tpu.vector_store %arg10[%c0_134, %c0_135], %277 {strides = array<i32>} : memref<8x128xf32, #tpu.memory_space<vmem>>, vector<8x128xf32>,
      %280 = arith.addi %3, %c4_i32 : i32
      %281 = vector.broadcast %280 : i32 to vector<8x1xi32>
      %282 = arith.cmpi slt, %281, %12 : vector<8x1xi32>
      %cst_136 = arith.constant 0.000000e+00 : f32
      %283 = vector.shape_cast %282 : vector<8x1xi1> to vector<8x1xi1>
      %284 = vector.broadcast %283 : vector<8x1xi1> to vector<8x128xi1>
      %285 = vector.broadcast %cst_136 : f32 to vector<8x128xf32>
      %286 = arith.select %284, %277, %285 : vector<8x128xi1>, vector<8x128xf32>
      %287 = arith.index_cast %c4_i32 : i32 to index
      %c0_137 = arith.constant 0 : index
      %c0_138 = arith.constant 0 : index
      %288 = vector.load %arg8[%287, %c0_137, %c0_138] : memref<8x8x128xf32, #tpu.memory_space<vmem>>, vector<1x8x128xf32>
      %289 = vector.shape_cast %288 : vector<1x8x128xf32> to vector<8x128xf32>
      %290 = vector.shape_cast %286 : vector<8x128xf32> to vector<1x8x128xf32>
      tpu.vector_store %arg8[%287, %c0_137, %c0_138], %290 {strides = array<i32>} : memref<8x8x128xf32, #tpu.memory_space<vmem>>, vector<1x8x128xf32>,
      %c5_i32 = arith.constant 5 : i32
      %c8_i32_139 = arith.constant 8 : i32
      %291 = arith.muli %c5_i32, %c8_i32_139 : i32
      %292 = tpu.assume_multiple %291, 8 : i32
      %293 = arith.index_cast %292 : i32 to index
      %c0_140 = arith.constant 0 : index
      %294 = vector.load %arg9[%293, %c0_140] : memref<64x512xf32, #tpu.memory_space<vmem>>, vector<8x512xf32>
      %c0_141 = arith.constant 0 : index
      %c0_142 = arith.constant 0 : index
      %295 = vector.load %arg10[%c0_141, %c0_142] : memref<8x128xf32, #tpu.memory_space<vmem>>, vector<8x128xf32>
      %296 = arith.truncf %295 : vector<8x128xf32> to vector<8x128xbf16>
      %c0_143 = arith.constant 0 : index
      %c0_144 = arith.constant 0 : index
      %297 = vector.load %arg5[%c0_143, %c0_144] : memref<128x512xbf16, #tpu.memory_space<vmem>>, vector<128x512xbf16>
      %cst_145 = arith.constant dense<0.000000e+00> : vector<8x512xf32>
      %298 = tpu.matmul %296, %297, %cst_145 {dimension_numbers = #tpu.dot_dimension_numbers<[1], [0], [0], [1], [0, 0, 1, 1], [], []>} : vector<8x128xbf16>, vector<128x512xbf16>, vector<8x512xf32> -> vector<8x512xf32>
      %299 = arith.addf %294, %298 : vector<8x512xf32>
      %300 = vector.extract_strided_slice %299 {offsets = [0, 0], sizes = [8, 128], strides = [1, 1]} : vector<8x512xf32> to vector<8x128xf32>
      %cst_146 = arith.constant 5.000000e-01 : f32
      %301 = vector.broadcast %cst_146 : f32 to vector<8x128xf32>
      %302 = arith.mulf %301, %300 : vector<8x128xf32>
      %303 = math.tanh %302 : vector<8x128xf32>
      %cst_147 = arith.constant 5.000000e-01 : f32
      %304 = vector.broadcast %cst_147 : f32 to vector<8x128xf32>
      %305 = arith.mulf %304, %303 : vector<8x128xf32>
      %cst_148 = arith.constant 5.000000e-01 : f32
      %306 = vector.broadcast %cst_148 : f32 to vector<8x128xf32>
      %307 = arith.addf %305, %306 : vector<8x128xf32>
      %308 = vector.extract_strided_slice %299 {offsets = [0, 128], sizes = [8, 128], strides = [1, 1]} : vector<8x512xf32> to vector<8x128xf32>
      %cst_149 = arith.constant 5.000000e-01 : f32
      %309 = vector.broadcast %cst_149 : f32 to vector<8x128xf32>
      %310 = arith.mulf %309, %308 : vector<8x128xf32>
      %311 = math.tanh %310 : vector<8x128xf32>
      %cst_150 = arith.constant 5.000000e-01 : f32
      %312 = vector.broadcast %cst_150 : f32 to vector<8x128xf32>
      %313 = arith.mulf %312, %311 : vector<8x128xf32>
      %cst_151 = arith.constant 5.000000e-01 : f32
      %314 = vector.broadcast %cst_151 : f32 to vector<8x128xf32>
      %315 = arith.addf %313, %314 : vector<8x128xf32>
      %316 = vector.extract_strided_slice %299 {offsets = [0, 256], sizes = [8, 128], strides = [1, 1]} : vector<8x512xf32> to vector<8x128xf32>
      %317 = math.tanh %316 : vector<8x128xf32>
      %318 = vector.extract_strided_slice %299 {offsets = [0, 384], sizes = [8, 128], strides = [1, 1]} : vector<8x512xf32> to vector<8x128xf32>
      %cst_152 = arith.constant 5.000000e-01 : f32
      %319 = vector.broadcast %cst_152 : f32 to vector<8x128xf32>
      %320 = arith.mulf %319, %318 : vector<8x128xf32>
      %321 = math.tanh %320 : vector<8x128xf32>
      %cst_153 = arith.constant 5.000000e-01 : f32
      %322 = vector.broadcast %cst_153 : f32 to vector<8x128xf32>
      %323 = arith.mulf %322, %321 : vector<8x128xf32>
      %cst_154 = arith.constant 5.000000e-01 : f32
      %324 = vector.broadcast %cst_154 : f32 to vector<8x128xf32>
      %325 = arith.addf %323, %324 : vector<8x128xf32>
      %c0_155 = arith.constant 0 : index
      %c0_156 = arith.constant 0 : index
      %326 = vector.load %arg11[%c0_155, %c0_156] : memref<8x128xf32, #tpu.memory_space<vmem>>, vector<8x128xf32>
      %327 = arith.mulf %315, %326 : vector<8x128xf32>
      %328 = arith.mulf %307, %317 : vector<8x128xf32>
      %329 = arith.addf %327, %328 : vector<8x128xf32>
      %330 = math.tanh %329 : vector<8x128xf32>
      %331 = arith.mulf %325, %330 : vector<8x128xf32>
      %c0_157 = arith.constant 0 : index
      %c0_158 = arith.constant 0 : index
      %332 = vector.load %arg11[%c0_157, %c0_158] : memref<8x128xf32, #tpu.memory_space<vmem>>, vector<8x128xf32>
      tpu.vector_store %arg11[%c0_157, %c0_158], %329 {strides = array<i32>} : memref<8x128xf32, #tpu.memory_space<vmem>>, vector<8x128xf32>,
      %c0_159 = arith.constant 0 : index
      %c0_160 = arith.constant 0 : index
      %333 = vector.load %arg10[%c0_159, %c0_160] : memref<8x128xf32, #tpu.memory_space<vmem>>, vector<8x128xf32>
      tpu.vector_store %arg10[%c0_159, %c0_160], %331 {strides = array<i32>} : memref<8x128xf32, #tpu.memory_space<vmem>>, vector<8x128xf32>,
      %334 = arith.addi %3, %c5_i32 : i32
      %335 = vector.broadcast %334 : i32 to vector<8x1xi32>
      %336 = arith.cmpi slt, %335, %12 : vector<8x1xi32>
      %cst_161 = arith.constant 0.000000e+00 : f32
      %337 = vector.shape_cast %336 : vector<8x1xi1> to vector<8x1xi1>
      %338 = vector.broadcast %337 : vector<8x1xi1> to vector<8x128xi1>
      %339 = vector.broadcast %cst_161 : f32 to vector<8x128xf32>
      %340 = arith.select %338, %331, %339 : vector<8x128xi1>, vector<8x128xf32>
      %341 = arith.index_cast %c5_i32 : i32 to index
      %c0_162 = arith.constant 0 : index
      %c0_163 = arith.constant 0 : index
      %342 = vector.load %arg8[%341, %c0_162, %c0_163] : memref<8x8x128xf32, #tpu.memory_space<vmem>>, vector<1x8x128xf32>
      %343 = vector.shape_cast %342 : vector<1x8x128xf32> to vector<8x128xf32>
      %344 = vector.shape_cast %340 : vector<8x128xf32> to vector<1x8x128xf32>
      tpu.vector_store %arg8[%341, %c0_162, %c0_163], %344 {strides = array<i32>} : memref<8x8x128xf32, #tpu.memory_space<vmem>>, vector<1x8x128xf32>,
      %c6_i32 = arith.constant 6 : i32
      %c8_i32_164 = arith.constant 8 : i32
      %345 = arith.muli %c6_i32, %c8_i32_164 : i32
      %346 = tpu.assume_multiple %345, 8 : i32
      %347 = arith.index_cast %346 : i32 to index
      %c0_165 = arith.constant 0 : index
      %348 = vector.load %arg9[%347, %c0_165] : memref<64x512xf32, #tpu.memory_space<vmem>>, vector<8x512xf32>
      %c0_166 = arith.constant 0 : index
      %c0_167 = arith.constant 0 : index
      %349 = vector.load %arg10[%c0_166, %c0_167] : memref<8x128xf32, #tpu.memory_space<vmem>>, vector<8x128xf32>
      %350 = arith.truncf %349 : vector<8x128xf32> to vector<8x128xbf16>
      %c0_168 = arith.constant 0 : index
      %c0_169 = arith.constant 0 : index
      %351 = vector.load %arg5[%c0_168, %c0_169] : memref<128x512xbf16, #tpu.memory_space<vmem>>, vector<128x512xbf16>
      %cst_170 = arith.constant dense<0.000000e+00> : vector<8x512xf32>
      %352 = tpu.matmul %350, %351, %cst_170 {dimension_numbers = #tpu.dot_dimension_numbers<[1], [0], [0], [1], [0, 0, 1, 1], [], []>} : vector<8x128xbf16>, vector<128x512xbf16>, vector<8x512xf32> -> vector<8x512xf32>
      %353 = arith.addf %348, %352 : vector<8x512xf32>
      %354 = vector.extract_strided_slice %353 {offsets = [0, 0], sizes = [8, 128], strides = [1, 1]} : vector<8x512xf32> to vector<8x128xf32>
      %cst_171 = arith.constant 5.000000e-01 : f32
      %355 = vector.broadcast %cst_171 : f32 to vector<8x128xf32>
      %356 = arith.mulf %355, %354 : vector<8x128xf32>
      %357 = math.tanh %356 : vector<8x128xf32>
      %cst_172 = arith.constant 5.000000e-01 : f32
      %358 = vector.broadcast %cst_172 : f32 to vector<8x128xf32>
      %359 = arith.mulf %358, %357 : vector<8x128xf32>
      %cst_173 = arith.constant 5.000000e-01 : f32
      %360 = vector.broadcast %cst_173 : f32 to vector<8x128xf32>
      %361 = arith.addf %359, %360 : vector<8x128xf32>
      %362 = vector.extract_strided_slice %353 {offsets = [0, 128], sizes = [8, 128], strides = [1, 1]} : vector<8x512xf32> to vector<8x128xf32>
      %cst_174 = arith.constant 5.000000e-01 : f32
      %363 = vector.broadcast %cst_174 : f32 to vector<8x128xf32>
      %364 = arith.mulf %363, %362 : vector<8x128xf32>
      %365 = math.tanh %364 : vector<8x128xf32>
      %cst_175 = arith.constant 5.000000e-01 : f32
      %366 = vector.broadcast %cst_175 : f32 to vector<8x128xf32>
      %367 = arith.mulf %366, %365 : vector<8x128xf32>
      %cst_176 = arith.constant 5.000000e-01 : f32
      %368 = vector.broadcast %cst_176 : f32 to vector<8x128xf32>
      %369 = arith.addf %367, %368 : vector<8x128xf32>
      %370 = vector.extract_strided_slice %353 {offsets = [0, 256], sizes = [8, 128], strides = [1, 1]} : vector<8x512xf32> to vector<8x128xf32>
      %371 = math.tanh %370 : vector<8x128xf32>
      %372 = vector.extract_strided_slice %353 {offsets = [0, 384], sizes = [8, 128], strides = [1, 1]} : vector<8x512xf32> to vector<8x128xf32>
      %cst_177 = arith.constant 5.000000e-01 : f32
      %373 = vector.broadcast %cst_177 : f32 to vector<8x128xf32>
      %374 = arith.mulf %373, %372 : vector<8x128xf32>
      %375 = math.tanh %374 : vector<8x128xf32>
      %cst_178 = arith.constant 5.000000e-01 : f32
      %376 = vector.broadcast %cst_178 : f32 to vector<8x128xf32>
      %377 = arith.mulf %376, %375 : vector<8x128xf32>
      %cst_179 = arith.constant 5.000000e-01 : f32
      %378 = vector.broadcast %cst_179 : f32 to vector<8x128xf32>
      %379 = arith.addf %377, %378 : vector<8x128xf32>
      %c0_180 = arith.constant 0 : index
      %c0_181 = arith.constant 0 : index
      %380 = vector.load %arg11[%c0_180, %c0_181] : memref<8x128xf32, #tpu.memory_space<vmem>>, vector<8x128xf32>
      %381 = arith.mulf %369, %380 : vector<8x128xf32>
      %382 = arith.mulf %361, %371 : vector<8x128xf32>
      %383 = arith.addf %381, %382 : vector<8x128xf32>
      %384 = math.tanh %383 : vector<8x128xf32>
      %385 = arith.mulf %379, %384 : vector<8x128xf32>
      %c0_182 = arith.constant 0 : index
      %c0_183 = arith.constant 0 : index
      %386 = vector.load %arg11[%c0_182, %c0_183] : memref<8x128xf32, #tpu.memory_space<vmem>>, vector<8x128xf32>
      tpu.vector_store %arg11[%c0_182, %c0_183], %383 {strides = array<i32>} : memref<8x128xf32, #tpu.memory_space<vmem>>, vector<8x128xf32>,
      %c0_184 = arith.constant 0 : index
      %c0_185 = arith.constant 0 : index
      %387 = vector.load %arg10[%c0_184, %c0_185] : memref<8x128xf32, #tpu.memory_space<vmem>>, vector<8x128xf32>
      tpu.vector_store %arg10[%c0_184, %c0_185], %385 {strides = array<i32>} : memref<8x128xf32, #tpu.memory_space<vmem>>, vector<8x128xf32>,
      %388 = arith.addi %3, %c6_i32 : i32
      %389 = vector.broadcast %388 : i32 to vector<8x1xi32>
      %390 = arith.cmpi slt, %389, %12 : vector<8x1xi32>
      %cst_186 = arith.constant 0.000000e+00 : f32
      %391 = vector.shape_cast %390 : vector<8x1xi1> to vector<8x1xi1>
      %392 = vector.broadcast %391 : vector<8x1xi1> to vector<8x128xi1>
      %393 = vector.broadcast %cst_186 : f32 to vector<8x128xf32>
      %394 = arith.select %392, %385, %393 : vector<8x128xi1>, vector<8x128xf32>
      %395 = arith.index_cast %c6_i32 : i32 to index
      %c0_187 = arith.constant 0 : index
      %c0_188 = arith.constant 0 : index
      %396 = vector.load %arg8[%395, %c0_187, %c0_188] : memref<8x8x128xf32, #tpu.memory_space<vmem>>, vector<1x8x128xf32>
      %397 = vector.shape_cast %396 : vector<1x8x128xf32> to vector<8x128xf32>
      %398 = vector.shape_cast %394 : vector<8x128xf32> to vector<1x8x128xf32>
      tpu.vector_store %arg8[%395, %c0_187, %c0_188], %398 {strides = array<i32>} : memref<8x8x128xf32, #tpu.memory_space<vmem>>, vector<1x8x128xf32>,
      %c7_i32 = arith.constant 7 : i32
      %c8_i32_189 = arith.constant 8 : i32
      %399 = arith.muli %c7_i32, %c8_i32_189 : i32
      %400 = tpu.assume_multiple %399, 8 : i32
      %401 = arith.index_cast %400 : i32 to index
      %c0_190 = arith.constant 0 : index
      %402 = vector.load %arg9[%401, %c0_190] : memref<64x512xf32, #tpu.memory_space<vmem>>, vector<8x512xf32>
      %c0_191 = arith.constant 0 : index
      %c0_192 = arith.constant 0 : index
      %403 = vector.load %arg10[%c0_191, %c0_192] : memref<8x128xf32, #tpu.memory_space<vmem>>, vector<8x128xf32>
      %404 = arith.truncf %403 : vector<8x128xf32> to vector<8x128xbf16>
      %c0_193 = arith.constant 0 : index
      %c0_194 = arith.constant 0 : index
      %405 = vector.load %arg5[%c0_193, %c0_194] : memref<128x512xbf16, #tpu.memory_space<vmem>>, vector<128x512xbf16>
      %cst_195 = arith.constant dense<0.000000e+00> : vector<8x512xf32>
      %406 = tpu.matmul %404, %405, %cst_195 {dimension_numbers = #tpu.dot_dimension_numbers<[1], [0], [0], [1], [0, 0, 1, 1], [], []>} : vector<8x128xbf16>, vector<128x512xbf16>, vector<8x512xf32> -> vector<8x512xf32>
      %407 = arith.addf %402, %406 : vector<8x512xf32>
      %408 = vector.extract_strided_slice %407 {offsets = [0, 0], sizes = [8, 128], strides = [1, 1]} : vector<8x512xf32> to vector<8x128xf32>
      %cst_196 = arith.constant 5.000000e-01 : f32
      %409 = vector.broadcast %cst_196 : f32 to vector<8x128xf32>
      %410 = arith.mulf %409, %408 : vector<8x128xf32>
      %411 = math.tanh %410 : vector<8x128xf32>
      %cst_197 = arith.constant 5.000000e-01 : f32
      %412 = vector.broadcast %cst_197 : f32 to vector<8x128xf32>
      %413 = arith.mulf %412, %411 : vector<8x128xf32>
      %cst_198 = arith.constant 5.000000e-01 : f32
      %414 = vector.broadcast %cst_198 : f32 to vector<8x128xf32>
      %415 = arith.addf %413, %414 : vector<8x128xf32>
      %416 = vector.extract_strided_slice %407 {offsets = [0, 128], sizes = [8, 128], strides = [1, 1]} : vector<8x512xf32> to vector<8x128xf32>
      %cst_199 = arith.constant 5.000000e-01 : f32
      %417 = vector.broadcast %cst_199 : f32 to vector<8x128xf32>
      %418 = arith.mulf %417, %416 : vector<8x128xf32>
      %419 = math.tanh %418 : vector<8x128xf32>
      %cst_200 = arith.constant 5.000000e-01 : f32
      %420 = vector.broadcast %cst_200 : f32 to vector<8x128xf32>
      %421 = arith.mulf %420, %419 : vector<8x128xf32>
      %cst_201 = arith.constant 5.000000e-01 : f32
      %422 = vector.broadcast %cst_201 : f32 to vector<8x128xf32>
      %423 = arith.addf %421, %422 : vector<8x128xf32>
      %424 = vector.extract_strided_slice %407 {offsets = [0, 256], sizes = [8, 128], strides = [1, 1]} : vector<8x512xf32> to vector<8x128xf32>
      %425 = math.tanh %424 : vector<8x128xf32>
      %426 = vector.extract_strided_slice %407 {offsets = [0, 384], sizes = [8, 128], strides = [1, 1]} : vector<8x512xf32> to vector<8x128xf32>
      %cst_202 = arith.constant 5.000000e-01 : f32
      %427 = vector.broadcast %cst_202 : f32 to vector<8x128xf32>
      %428 = arith.mulf %427, %426 : vector<8x128xf32>
      %429 = math.tanh %428 : vector<8x128xf32>
      %cst_203 = arith.constant 5.000000e-01 : f32
      %430 = vector.broadcast %cst_203 : f32 to vector<8x128xf32>
      %431 = arith.mulf %430, %429 : vector<8x128xf32>
      %cst_204 = arith.constant 5.000000e-01 : f32
      %432 = vector.broadcast %cst_204 : f32 to vector<8x128xf32>
      %433 = arith.addf %431, %432 : vector<8x128xf32>
      %c0_205 = arith.constant 0 : index
      %c0_206 = arith.constant 0 : index
      %434 = vector.load %arg11[%c0_205, %c0_206] : memref<8x128xf32, #tpu.memory_space<vmem>>, vector<8x128xf32>
      %435 = arith.mulf %423, %434 : vector<8x128xf32>
      %436 = arith.mulf %415, %425 : vector<8x128xf32>
      %437 = arith.addf %435, %436 : vector<8x128xf32>
      %438 = math.tanh %437 : vector<8x128xf32>
      %439 = arith.mulf %433, %438 : vector<8x128xf32>
      %c0_207 = arith.constant 0 : index
      %c0_208 = arith.constant 0 : index
      %440 = vector.load %arg11[%c0_207, %c0_208] : memref<8x128xf32, #tpu.memory_space<vmem>>, vector<8x128xf32>
      tpu.vector_store %arg11[%c0_207, %c0_208], %437 {strides = array<i32>} : memref<8x128xf32, #tpu.memory_space<vmem>>, vector<8x128xf32>,
      %c0_209 = arith.constant 0 : index
      %c0_210 = arith.constant 0 : index
      %441 = vector.load %arg10[%c0_209, %c0_210] : memref<8x128xf32, #tpu.memory_space<vmem>>, vector<8x128xf32>
      tpu.vector_store %arg10[%c0_209, %c0_210], %439 {strides = array<i32>} : memref<8x128xf32, #tpu.memory_space<vmem>>, vector<8x128xf32>,
      %442 = arith.addi %3, %c7_i32 : i32
      %443 = vector.broadcast %442 : i32 to vector<8x1xi32>
      %444 = arith.cmpi slt, %443, %12 : vector<8x1xi32>
      %cst_211 = arith.constant 0.000000e+00 : f32
      %445 = vector.shape_cast %444 : vector<8x1xi1> to vector<8x1xi1>
      %446 = vector.broadcast %445 : vector<8x1xi1> to vector<8x128xi1>
      %447 = vector.broadcast %cst_211 : f32 to vector<8x128xf32>
      %448 = arith.select %446, %439, %447 : vector<8x128xi1>, vector<8x128xf32>
      %449 = arith.index_cast %c7_i32 : i32 to index
      %c0_212 = arith.constant 0 : index
      %c0_213 = arith.constant 0 : index
      %450 = vector.load %arg8[%449, %c0_212, %c0_213] : memref<8x8x128xf32, #tpu.memory_space<vmem>>, vector<1x8x128xf32>
      %451 = vector.shape_cast %450 : vector<1x8x128xf32> to vector<8x128xf32>
      %452 = vector.shape_cast %448 : vector<8x128xf32> to vector<1x8x128xf32>
      tpu.vector_store %arg8[%449, %c0_212, %c0_213], %452 {strides = array<i32>} : memref<8x8x128xf32, #tpu.memory_space<vmem>>, vector<1x8x128xf32>,
      %c8_i32_214 = arith.constant 8 : i32
    } else {
    }
    return
  }
  func.func @transform_0(%arg0: i32, %arg1: i32, %arg2: memref<1xi32, #tpu.memory_space<smem>>) -> (i32, i32, i32) {
    %c0_i32 = arith.constant 0 : i32
    %c0_i32_0 = arith.constant 0 : i32
    return %arg1, %arg0, %c0_i32 : i32, i32, i32
  }
  func.func @transform_1(%arg0: i32, %arg1: i32, %arg2: memref<1xi32, #tpu.memory_space<smem>>) -> (i32, i32) {
    %c0_i32 = arith.constant 0 : i32
    %c0_i32_0 = arith.constant 0 : i32
    %c0_i32_1 = arith.constant 0 : i32
    return %c0_i32, %c0_i32_0 : i32, i32
  }
  func.func @transform_2(%arg0: i32, %arg1: i32, %arg2: memref<1xi32, #tpu.memory_space<smem>>) -> (i32, i32) {
    %c0_i32 = arith.constant 0 : i32
    %c0_i32_0 = arith.constant 0 : i32
    %c0_i32_1 = arith.constant 0 : i32
    return %c0_i32, %c0_i32_0 : i32, i32
  }
  func.func @transform_3(%arg0: i32, %arg1: i32, %arg2: memref<1xi32, #tpu.memory_space<smem>>) -> (i32, i32) {
    %c0_i32 = arith.constant 0 : i32
    %c0_i32_0 = arith.constant 0 : i32
    %c0_i32_1 = arith.constant 0 : i32
    return %c0_i32, %c0_i32_0 : i32, i32
  }
  func.func @transform_4(%arg0: i32, %arg1: i32, %arg2: memref<1xi32, #tpu.memory_space<smem>>) -> (i32, i32) {
    %c0_i32 = arith.constant 0 : i32
    %c0_i32_0 = arith.constant 0 : i32
    return %arg0, %c0_i32 : i32, i32
  }
  func.func @transform_5(%arg0: i32, %arg1: i32, %arg2: memref<1xi32, #tpu.memory_space<smem>>) -> (i32, i32, i32) {
    %c0_i32 = arith.constant 0 : i32
    %c0_i32_0 = arith.constant 0 : i32
    return %arg1, %arg0, %c0_i32 : i32, i32, i32
  }
}

</mosaic_0001>

<bundles_post_ra>
// kernel: tpu_custom_call.1
= control target key start
LH: loop header
LB: loop body
LE: loop exit
PB: predicated region body
PF: predicated region fallthrough
CT: control target
= control target key end

     0   :  { %12 = vsyncpa [#allocation8], 0  ;;  %s4203_s0 = inlined_call_operand.<no memory space> [shape: s32[1], index: 0, kind: input, shape index: {}]   ;;  %s4204_s1 = inlined_call_operand.hbm [shape: bf16[8,8,16], index: 1, kind: input, shape index: {}]   ;;  %s4205_s2 = inlined_call_operand.hbm [shape: bf16[16,512], index: 2, kind: input, shape index: {}]   ;;  %s4206_s3 = inlined_call_operand.hbm [shape: bf16[128,512], index: 3, kind: input, shape index: {}]   ;;  %s4207_s4 = inlined_call_operand.vmem [shape: f32[1,512], index: 4, kind: input, shape index: {}]   ;;  %s4208_s5 = inlined_call_operand.vmem [shape: s32[8,1], index: 5, kind: input, shape index: {}]   ;;  %s4209_s6 = inlined_call_operand.hbm [shape: f32[8,8,128], index: 6, kind: output, shape index: {}]  }
   0x1   :  { %13 = vsyncpa [#allocation11], 0 }
   0x2   :  { %14 = vsyncpa [#allocation9], 0  ;;  %s3522_s21 = smov [#allocation10]   ;;  %s3428_s25 = scalar_lea.hbm %s4205_s2, 512 }
   0x3   :  { %s32_s22 = sshll.u32 %s3522_s21, 4  ;;  %p3429_p0 = scmp.ne.s32.totalorder %s4205_s2, %s3428_s25  ;;  %s33_s22 = int_to_ptr.vmem [resolvable:$true] %s32_s22 }
   0x4   :  { %p3432_p1 = scmp.lt.u32.totalorder %s3428_s25, %s4205_s2 }
   0x6   :  { %p3434_p2 = pnand %p3432_p1, %p3429_p0 }
   0x8   :  { %3437 = shalt.err (!%p3434_p2)
}
   0x9   :  { %s3438_s30 = scalar_lea.vmem %s33_s22, 512  ;;  %p3443_p4 = scmp.lt.s32.totalorder %s33_s22, %s33_s22 }
   0xa   :  { %p3439_p3 = scmp.ne.s32.totalorder %s33_s22, %s3438_s30  ;;  %p3444_p5 = scmp.lt.s32.totalorder %s3438_s30, %s3438_s30 }
   0xc   :  { %p3445_p6 = por %p3444_p5, %p3443_p4 }
   0xe   :  { %p3446_p7 = pnand %p3445_p6, %p3439_p3 }
  0x10   :  { %3449 = shalt.err (!%p3446_p7)
}
  0x11   :  { %s3523_s7 = smov 256   ;;  %s3524_s8 = smov 16  }
  0x12   :  { %38 = dma.hbm_to_vmem [thread:$0]  %s4205_s2, 512, %s33_s22, [#allocation11], %s3523_s7, %s3523_s7, %s3524_s8  }
  0x13   :  { %s3525_s11 = smov [#allocation7]   ;;  %s3450_s15 = scalar_lea.hbm %s4204_s1, 512 }
  0x14   :  { %s20_s12 = sshll.u32 %s3525_s11, 4  ;;  %p3451_p8 = scmp.ne.s32.totalorder %s4204_s1, %s3450_s15  ;;  %s21_s12 = int_to_ptr.vmem [resolvable:$true] %s20_s12 }
  0x15   :  { %p3454_p9 = scmp.lt.u32.totalorder %s3450_s15, %s4204_s1 }
  0x17   :  { %p3456_p10 = pnand %p3454_p9, %p3451_p8 }
  0x19   :  { %3459 = shalt.err (!%p3456_p10)
}
  0x1a   :  { %s3460_s20 = scalar_lea.vmem %s21_s12, 512  ;;  %p3465_p12 = scmp.lt.s32.totalorder %s21_s12, %s21_s12 }
  0x1b   :  { %p3461_p11 = scmp.ne.s32.totalorder %s21_s12, %s3460_s20  ;;  %p3466_p13 = scmp.lt.s32.totalorder %s3460_s20, %s3460_s20 }
  0x1d   :  { %p3467_p0 = por %p3466_p13, %p3465_p12 }
  0x1f   :  { %p3468_p1 = pnand %p3467_p0, %p3461_p11 }
  0x21   :  { %3471 = shalt.err (!%p3468_p1)
}
  0x22   :  { %s3526_s2 = smov 64   ;;  %s3527_s21 = smov 4  }
  0x23   :  { %26 = dma.hbm_to_vmem [thread:$0]  %s4204_s1, 512, %s21_s12, [#allocation8], %s3526_s2, %s3526_s2, %s3527_s21  }
  0x24   :  { %s3528_s24 = smov [#allocation12]   ;;  %s3472_s28 = scalar_lea.hbm %s4206_s3, 4096 }
  0x25   :  { %s44_s25 = sshll.u32 %s3528_s24, 4  ;;  %p3473_p2 = scmp.ne.s32.totalorder %s4206_s3, %s3472_s28  ;;  %s45_s25 = int_to_ptr.vmem [resolvable:$true] %s44_s25 }
  0x26   :  { %p3476_p3 = scmp.lt.u32.totalorder %s3472_s28, %s4206_s3 }
  0x28   :  { %p3478_p4 = pnand %p3476_p3, %p3473_p2 }
  0x2a   :  { %3481 = shalt.err (!%p3478_p4)
}
  0x2b   :  { %s3482_s11 = scalar_lea.vmem %s45_s25, 4096  ;;  %p3487_p6 = scmp.lt.s32.totalorder %s45_s25, %s45_s25 }
  0x2c   :  { %p3483_p5 = scmp.ne.s32.totalorder %s45_s25, %s3482_s11  ;;  %p3488_p7 = scmp.lt.s32.totalorder %s3482_s11, %s3482_s11 }
  0x2e   :  { %p3489_p8 = por %p3488_p7, %p3487_p6 }
  0x30   :  { %p3490_p9 = pnand %p3489_p8, %p3483_p5 }
  0x32   :  { %3493 = shalt.err (!%p3490_p9)
}
  0x33   :  { %50 = dma.hbm_to_vmem [thread:$0]  %s4206_s3, 4096, %s45_s25, [#allocation11], %s3523_s7, %s3523_s7, %s3524_s8  }
  0x34   :  { %3516 = dma.done.wait [#allocation8], 512  }
  0x35   :  { %3517 = vsyncadd [#allocation8], 4294966784 }
  0x36   :  { %3518 = dma.done.wait [#allocation11], 4608  }
  0x37   :  { %3519 = vsyncadd [#allocation11], 4294962688  ;;  %v3529_v0 = vmov 0.0   ;;  %p2932_p10 = scmp.gt.s32.totalorder %s4203_s0, 0 }
  0x38   :  { %69 = vst [vmem:[#allocation3] sm:$0xff] %v3529_v0  ;;  %70 = vst [vmem:[#allocation4] sm:$0xff] %v3529_v0  ;;  %v3530_v1 = vmov (!%p2932_p10), 0.0  }
  0x39   :  { %77 = sbr.rel (%p2932_p10) target bundleno = 64 (0x40), region = 41  ;;  %78 = vst [vmem:[#allocation13] sm:$0xff] (!%p2932_p10), %v3530_v1  ;;  %79 = vst [vmem:[#allocation13 + $0x8] sm:$0xff] (!%p2932_p10), %v3530_v1 }
  0x3a   :  { %80 = vst [vmem:[#allocation13 + $0x10] sm:$0xff] (!%p2932_p10), %v3530_v1  ;;  %81 = vst [vmem:[#allocation13 + $0x18] sm:$0xff] (!%p2932_p10), %v3530_v1 }
  0x3b   :  { %82 = vst [vmem:[#allocation13 + $0x20] sm:$0xff] (!%p2932_p10), %v3530_v1  ;;  %83 = vst [vmem:[#allocation13 + $0x28] sm:$0xff] (!%p2932_p10), %v3530_v1 }
  0x3c   :  { %84 = vst [vmem:[#allocation13 + $0x30] sm:$0xff] (!%p2932_p10), %v3530_v1  ;;  %85 = vst [vmem:[#allocation13 + $0x38] sm:$0xff] (!%p2932_p10), %v3530_v1 }
  0x40 PF:  { %p2933_p11 = scmp.le.s32.totalorder %s4203_s0, 0 }
  0x42   :  { %88 = sbr.rel (%p2933_p11) target bundleno = 2120 (0x848), region = 45 }
  0x49   :  { %v3229_v2 = vld [vmem:[#allocation10 + $0x4] ss:$16 sps:$4 sm:$0xff]   ;;  %v3231_v3 = vld [vmem:[#allocation10 + $0xc] ss:$16 sps:$4 sm:$0xff]   ;;  %v4210_v4 = vmov 0   ;;  %vm164_vm0 = vcmask 130048   ;;  %v104_v48 = vlaneseq }
  0x4a   :  { %209 = vmatprep.mubr.bf16.mxu0 %v4210_v4  ;;  %282 = vmatprep.mubr.bf16.mxu1 %v4210_v4  ;;  %v3233_v5 = vld [vmem:[#allocation10] ss:$16 sps:$4 sm:$0xff]   ;;  %v3234_v6 = vld [vmem:[#allocation10 + $0x8] ss:$16 sps:$4 sm:$0xff]   ;;  %v3624_v9 = vld [vmem:[#allocation12 + $0x4] ss:$16 sps:$4 sm:$0xff]  }
  0x4b   :  { %177 = vmatprep.subr.bf16.mxu0 %v3229_v2  ;;  %3227 = vset.pattern.permute.xlu0 %v4210_v4  ;;  %v3235_v7 = vld [vmem:[#allocation7] sm:$0xff]   ;;  %v3626_v10 = vld [vmem:[#allocation12 + $0x8] ss:$16 sps:$4 sm:$0xff]   ;;  %v3629_v11 = vld [vmem:[#allocation12 + $0xc] ss:$16 sps:$4 sm:$0xff]   ;;  %v105_v49 = vshrl.u32 %v104_v48, 7 }
  0x4c   :  { %250 = vmatprep.subr.bf16.mxu1 %v3231_v3  ;;  %3228 = vset.pattern.permute.xlu1 %v4210_v4  ;;  %v3622_v8 = vld [vmem:[#allocation12] ss:$16 sps:$4 sm:$0xff]   ;;  %v3633_v12 = vld [vmem:[#allocation12 + $0x24] ss:$16 sps:$4 sm:$0xff]   ;;  %v3639_v14 = vld [vmem:[#allocation12 + $0x2c] ss:$16 sps:$4 sm:$0xff]  }
  0x4d   :  { %178 = vmatpush1.bf16.msra.mxu0 %v3233_v5  ;;  %251 = vmatpush1.bf16.msra.mxu1 %v3234_v6  ;;  %v3637_v13 = vld [vmem:[#allocation12 + $0x20] ss:$16 sps:$4 sm:$0xff]   ;;  %v3643_v15 = vld [vmem:[#allocation12 + $0x28] ss:$16 sps:$4 sm:$0xff]   ;;  %v3648_v17 = vld [vmem:[#allocation12 + $0x44] ss:$16 sps:$4 sm:$0xff]  }
  0x4e   :  { %556 = vmatprep.subr.bf16.mxu0 %v3624_v9  ;;  %597 = vmatprep.subr.bf16.mxu1 %v3629_v11  ;;  %v3248_v16 = vld [vmem:[#allocation7 + $0x8] sm:$0xff]   ;;  %v3651_v18 = vld [vmem:[#allocation12 + $0x40] ss:$16 sps:$4 sm:$0xff]   ;;  %v3659_v21 = vld [vmem:[#allocation12 + $0x64] ss:$16 sps:$4 sm:$0xff]   ;;  %v114_v50 = vsub.s32 2, %v105_v49 }
  0x4f   :  { %v3653_v19 = vld [vmem:[#allocation12 + $0x4c] ss:$16 sps:$4 sm:$0xff]   ;;  %v3657_v20 = vld [vmem:[#allocation12 + $0x48] ss:$16 sps:$4 sm:$0xff]   ;;  %v3667_v23 = vld [vmem:[#allocation12 + $0x60] ss:$16 sps:$4 sm:$0xff]  }
  0x50   :  { %2942 = vmatmul.mubr.msk.bf16.vlgmr.msra.gmra.mrb[0].mxu0 %vm164_vm0, %v3235_v7  ;;  %2946 = vmatmul.mubr.msk.bf16.vlgmr.msra.gmra.mrb[0].mxu1 %vm164_vm0, %v3235_v7  ;;  %v3664_v22 = vld [vmem:[#allocation12 + $0x6c] ss:$16 sps:$4 sm:$0xff]   ;;  %v3672_v24 = vld [vmem:[#allocation12 + $0x68] ss:$16 sps:$4 sm:$0xff]   ;;  %v3674_v25 = vld [vmem:[#allocation12 + $0x84] ss:$16 sps:$4 sm:$0xff]  }
  0x51   :  { %557 = vmatpush1.bf16.msra.mxu0 %v3622_v8  ;;  %598 = vmatpush1.bf16.msra.mxu1 %v3626_v10  ;;  %v3678_v26 = vld [vmem:[#allocation12 + $0x8c] ss:$16 sps:$4 sm:$0xff]   ;;  %v3261_v27 = vld [vmem:[#allocation7 + $0x10] sm:$0xff]   ;;  %v3685_v29 = vld [vmem:[#allocation12 + $0x88] ss:$16 sps:$4 sm:$0xff]   ;;  %v118_v51 = vsub.s32 3, %v105_v49 }
  0x52   :  { %558 = vmatprep.subr.bf16.mxu0 %v3633_v12  ;;  %599 = vmatprep.subr.bf16.mxu1 %v3639_v14  ;;  %v3681_v28 = vld [vmem:[#allocation12 + $0x80] ss:$16 sps:$4 sm:$0xff]   ;;  %v3687_v30 = vld [vmem:[#allocation12 + $0xa4] ss:$16 sps:$4 sm:$0xff]   ;;  %v3690_v31 = vld [vmem:[#allocation12 + $0xac] ss:$16 sps:$4 sm:$0xff]  }
  0x53   :  { %219 = vmatprep.mubr.bf16.mxu0 %v4210_v4  ;;  %292 = vmatprep.mubr.bf16.mxu1 %v4210_v4  ;;  %v3694_v32 = vld [vmem:[#allocation12 + $0xa0] ss:$16 sps:$4 sm:$0xff]   ;;  %v3697_v33 = vld [vmem:[#allocation12 + $0xa8] ss:$16 sps:$4 sm:$0xff]   ;;  %v3702_v34 = vld [vmem:[#allocation12 + $0xc4] ss:$16 sps:$4 sm:$0xff]  }
  0x54   :  { %v3274_v35 = vld [vmem:[#allocation7 + $0x18] sm:$0xff]   ;;  %v3708_v37 = vld [vmem:[#allocation12 + $0xc0] ss:$16 sps:$4 sm:$0xff]   ;;  %v3713_v39 = vld [vmem:[#allocation12 + $0xe4] ss:$16 sps:$4 sm:$0xff]   ;;  %v106_v52 = vsub.s32 0, %v105_v49 }
  0x55   :  { %559 = vmatpush1.bf16.msra.mxu0 %v3637_v13  ;;  %600 = vmatpush1.bf16.msra.mxu1 %v3643_v15  ;;  %v3706_v36 = vld [vmem:[#allocation12 + $0xcc] ss:$16 sps:$4 sm:$0xff]   ;;  %v3710_v38 = vld [vmem:[#allocation12 + $0xc8] ss:$16 sps:$4 sm:$0xff]   ;;  %v3720_v41 = vld [vmem:[%s4208_s5] sm:$0xff]  ;;  %v110_v54 = vsub.s32 1, %v105_v49 }
  0x56   :  { %560 = vmatprep.subr.bf16.mxu0 %v3648_v17  ;;  %601 = vmatprep.subr.bf16.mxu1 %v3653_v19  ;;  %v3715_v40 = vld [vmem:[#allocation12 + $0xec] ss:$16 sps:$4 sm:$0xff]   ;;  %vm2982_vm1 = vcmp.gt.s32.totalorder %v3720_v41, 0  ;;  %v3726_v42 = vld [vmem:[#allocation12 + $0xe0] ss:$16 sps:$4 sm:$0xff]   ;;  %vm3015_vm2 = vcmp.gt.s32.totalorder %v3720_v41, 1 }
  0x57   :  { %v362_v43 = vld [vmem:[#allocation3] sm:$0xff]  ;;  %v3730_v44 = vld [vmem:[#allocation12 + $0xe8] ss:$16 sps:$4 sm:$0xff]   ;;  %v665_v45 = vsel %vm2982_vm1, 1, %v4210_v4  ;;  %v983_v47 = vsel %vm3015_vm2, 1, %v4210_v4  ;;  %vm3048_vm4 = vcmp.gt.s32.totalorder %v3720_v41, 2 }
  0x58   :  { %2943 = vmatmul.mubr.msk.bf16.gmra.mrb[4].mxu0 %vm164_vm0, %v3248_v16  ;;  %2947 = vmatmul.mubr.msk.bf16.gmra.mrb[4].mxu1 %vm164_vm0, %v3248_v16  ;;  %v363_v46 = vpack.c.bf16 %v362_v43, %v362_v43  ;;  %v102_v53 = vld [vmem:[%s4207_s4] sm:$0xf]  ;;  %vm3081_vm6 = vcmp.gt.s32.totalorder %v3720_v41, 3  ;;  %vm3114_vm8 = vcmp.gt.s32.totalorder %v3720_v41, 4 }
  0x59   :  { %561 = vmatpush1.bf16.msra.mxu0 %v3651_v18  ;;  %229 = vmatprep.mubr.bf16.mxu0 %v4210_v4  ;;  %v3782_v55 = vrot.slane %v102_v53, %v114_v50  ;;  %v3788_v58 = vrot.slane %v102_v53, %v118_v51  ;;  %v107_v59 = vrot.slane %v102_v53, %v106_v52 }
  0x5a   :  { %602 = vmatpush1.bf16.msra.mxu1 %v3657_v20  ;;  %562 = vmatprep.subr.bf16.mxu0 %v3659_v21  ;;  %v111_v62 = vrot.slane %v102_v53, %v110_v54 }
  0x5b   :  { %603 = vmatprep.subr.bf16.mxu1 %v3664_v22  ;;  %302 = vmatprep.mubr.bf16.mxu1 %v4210_v4 }
  0x5c   :  { %667 = vperm.xlu0 %3227, %v665_v45  }
  0x5d   :  { %563 = vmatpush1.bf16.msra.mxu0 %v3667_v23 }
  0x5e   :  { %604 = vmatpush1.bf16.msra.mxu1 %v3672_v24  ;;  %564 = vmatprep.subr.bf16.mxu0 %v3674_v25 }
  0x5f   :  { %605 = vmatprep.subr.bf16.mxu1 %v3678_v26 }
  0x60   :  { %2944 = vmatmul.mubr.msk.bf16.gmra.mrb[8].mxu0 %vm164_vm0, %v3261_v27  ;;  %2948 = vmatmul.mubr.msk.bf16.gmra.mrb[8].mxu1 %vm164_vm0, %v3261_v27 }
  0x61   :  { %565 = vmatpush1.bf16.msra.mxu0 %v3681_v28  ;;  %239 = vmatprep.mubr.bf16.mxu0 %v4210_v4 }
  0x62   :  { %606 = vmatpush1.bf16.msra.mxu1 %v3685_v29  ;;  %566 = vmatprep.subr.bf16.mxu0 %v3687_v30 }
  0x63   :  { %607 = vmatprep.subr.bf16.mxu1 %v3690_v31  ;;  %312 = vmatprep.mubr.bf16.mxu1 %v4210_v4 }
  0x64   :  { %985 = vperm.xlu0 %3227, %v983_v47  }
  0x65   :  { %567 = vmatpush1.bf16.msra.mxu0 %v3694_v32 }
  0x66   :  { %608 = vmatpush1.bf16.msra.mxu1 %v3697_v33  ;;  %568 = vmatprep.subr.bf16.mxu0 %v3702_v34 }
  0x67   :  { %609 = vmatprep.subr.bf16.mxu1 %v3706_v36 }
  0x68   :  { %2945 = vmatmul.mubr.msk.bf16.gmra.mrb[12].mxu0 %vm164_vm0, %v3274_v35  ;;  %2949 = vmatmul.mubr.msk.bf16.gmra.mrb[12].mxu1 %vm164_vm0, %v3274_v35 }
  0x69   :  { %569 = vmatpush1.bf16.msra.mxu0 %v3708_v37  ;;  %588 = vmatprep.mubr.bf16.mxu0 %v4210_v4 }
  0x6a   :  { %610 = vmatpush1.bf16.msra.mxu1 %v3710_v38  ;;  %570 = vmatprep.subr.bf16.mxu0 %v3713_v39 }
  0x6b   :  { %611 = vmatprep.subr.bf16.mxu1 %v3715_v40  ;;  %629 = vmatprep.mubr.bf16.mxu1 %v4210_v4 }
  0x6d   :  { %571 = vmatpush1.bf16.msra.mxu0 %v3726_v42 }
  0x6e   :  { %612 = vmatpush1.bf16.msra.mxu1 %v3730_v44  ;;  %873 = vmatprep.subr.bf16.mxu0 %v3624_v9 }
  0x6f   :  { %914 = vmatprep.subr.bf16.mxu1 %v3629_v11 }
  0x70   :  { %589 = vmatmul.mubr.bf16.vlgmr.msra.gmra.mrb[16].mxu0 %v363_v46 }
  0x71   :  { %630 = vmatmul.mubr.bf16.vlgmr.msra.gmra.mrb[16].mxu1 %v363_v46  ;;  %874 = vmatpush1.bf16.msra.mxu0 %v3622_v8 }
  0x72   :  { %915 = vmatpush1.bf16.msra.mxu1 %v3626_v10  ;;  %875 = vmatprep.subr.bf16.mxu0 %v3633_v12 }
  0x73   :  { %916 = vmatprep.subr.bf16.mxu1 %v3639_v14  ;;  %905 = vmatprep.mubr.bf16.mxu0 %v4210_v4 }
  0x74   :  { %946 = vmatprep.mubr.bf16.mxu1 %v4210_v4 }
  0x75   :  { %876 = vmatpush1.bf16.msra.mxu0 %v3637_v13 }
  0x76   :  { %917 = vmatpush1.bf16.msra.mxu1 %v3643_v15  ;;  %877 = vmatprep.subr.bf16.mxu0 %v3648_v17 }
  0x77   :  { %918 = vmatprep.subr.bf16.mxu1 %v3653_v19 }
  0x79   :  { %878 = vmatpush1.bf16.msra.mxu0 %v3651_v18 }
  0x7a   :  { %919 = vmatpush1.bf16.msra.mxu1 %v3657_v20  ;;  %879 = vmatprep.subr.bf16.mxu0 %v3659_v21 }
  0x7b   :  { %920 = vmatprep.subr.bf16.mxu1 %v3664_v22 }
  0x7d   :  { %880 = vmatpush1.bf16.msra.mxu0 %v3667_v23 }
  0x7e   :  { %921 = vmatpush1.bf16.msra.mxu1 %v3672_v24  ;;  %881 = vmatprep.subr.bf16.mxu0 %v3674_v25 }
  0x7f   :  { %922 = vmatprep.subr.bf16.mxu1 %v3678_v26 }
  0x81   :  { %882 = vmatpush1.bf16.msra.mxu0 %v3681_v28 }
  0x82   :  { %923 = vmatpush1.bf16.msra.mxu1 %v3685_v29  ;;  %883 = vmatprep.subr.bf16.mxu0 %v3687_v30 }
  0x83   :  { %924 = vmatprep.subr.bf16.mxu1 %v3690_v31 }
  0x85   :  { %884 = vmatpush1.bf16.msra.mxu0 %v3694_v32 }
  0x86   :  { %925 = vmatpush1.bf16.msra.mxu1 %v3697_v33  ;;  %885 = vmatprep.subr.bf16.mxu0 %v3702_v34 }
  0x87   :  { %926 = vmatprep.subr.bf16.mxu1 %v3706_v36 }
  0x89   :  { %886 = vmatpush1.bf16.msra.mxu0 %v3708_v37 }
  0x8a   :  { %927 = vmatpush1.bf16.msra.mxu1 %v3710_v38  ;;  %887 = vmatprep.subr.bf16.mxu0 %v3713_v39 }
  0x8b   :  { %928 = vmatprep.subr.bf16.mxu1 %v3715_v40 }
  0x8d   :  { %888 = vmatpush1.bf16.msra.mxu0 %v3726_v42 }
  0x8e   :  { %929 = vmatpush1.bf16.msra.mxu1 %v3730_v44  ;;  %1192 = vmatprep.subr.bf16.mxu0 %v3624_v9 }
  0x8f   :  { %1233 = vmatprep.subr.bf16.mxu1 %v3629_v11 }
 0x123   :  { %v3784_v56 = vpop.f32.mrb[0].mxu0  ;;  %v3786_v57 = vpop.f32.mrb[0].mxu1 }
 0x124   :  { %v213_v60 = vpop.f32.mrb[1].mxu0  ;;  %v286_v61 = vpop.f32.mrb[1].mxu1 }
 0x125   :  { %v215_v63 = vpop.f32.mrb[2].mxu0  ;;  %v288_v0 = vpop.f32.mrb[2].mxu1 }
 0x126   :  { %v3790_v1 = vadd.f32 %v215_v63, %v107_v59  ;;  %v217_v2 = vpop.f32.mrb[3].mxu0  ;;  %v3793_v3 = vadd.f32 %v288_v0, %v3782_v55  ;;  %v290_v5 = vpop.f32.mrb[3].mxu1 }
 0x127   :  { %v3795_v6 = vadd.f32 %v217_v2, %v111_v62  ;;  %v3798_v7 = vadd.f32 %v290_v5, %v3788_v58 }
 0x12b   :  { %v221_v9 = vpop.f32.mrb[4].mxu0  ;;  %v294_v11 = vpop.f32.mrb[4].mxu1 }
 0x12c   :  { %v3800_v16 = vadd.f32 %v221_v9, %v107_v59  ;;  %v223_v27 = vpop.f32.mrb[5].mxu0  ;;  %v3803_v35 = vadd.f32 %v294_v11, %v3782_v55  ;;  %v296_v43 = vpop.f32.mrb[5].mxu1 }
 0x12d   :  { %v3805_v45 = vadd.f32 %v223_v27, %v111_v62  ;;  %v225_v46 = vpop.f32.mrb[6].mxu0  ;;  %v3808_v47 = vadd.f32 %v296_v43, %v3788_v58  ;;  %v298_v48 = vpop.f32.mrb[6].mxu1 }
 0x12e   :  { %v3810_v49 = vadd.f32 %v225_v46, %v107_v59  ;;  %v227_v50 = vpop.f32.mrb[7].mxu0  ;;  %v3813_v51 = vadd.f32 %v298_v48, %v3782_v55  ;;  %v300_v52 = vpop.f32.mrb[7].mxu1 }
 0x12f   :  { %v3815_v53 = vadd.f32 %v227_v50, %v111_v62  ;;  %v3818_v54 = vadd.f32 %v300_v52, %v3788_v58 }
 0x130   :  { %4212 = vst [vmem:[#allocation17_spill] sm:$0xff] %v3810_v49  ;;  %4213 = vst [vmem:[#allocation18_spill] sm:$0xff] %v3813_v51 }
 0x131   :  { %4214 = vst [vmem:[#allocation19_spill] sm:$0xff] %v3815_v53  ;;  %4215 = vst [vmem:[#allocation20_spill] sm:$0xff] %v3818_v54 }
 0x133   :  { %v231_v63 = vpop.f32.mrb[8].mxu0  ;;  %v304_v0 = vpop.f32.mrb[8].mxu1 }
 0x134   :  { %v3820_v2 = vadd.f32 %v231_v63, %v107_v59  ;;  %v233_v5 = vpop.f32.mrb[9].mxu0  ;;  %v3823_v9 = vadd.f32 %v304_v0, %v3782_v55  ;;  %v306_v11 = vpop.f32.mrb[9].mxu1 }
 0x135   :  { %v3825_v27 = vadd.f32 %v233_v5, %v111_v62  ;;  %v235_v43 = vpop.f32.mrb[10].mxu0  ;;  %v3828_v46 = vadd.f32 %v306_v11, %v3788_v58  ;;  %v308_v48 = vpop.f32.mrb[10].mxu1 }
 0x136   :  { %4216 = vst [vmem:[#allocation21_spill] sm:$0xff] %v3820_v2  ;;  %4217 = vst [vmem:[#allocation22_spill] sm:$0xff] %v3823_v9  ;;  %v3830_v50 = vadd.f32 %v235_v43, %v107_v59  ;;  %v237_v52 = vpop.f32.mrb[11].mxu0  ;;  %v3833_v4 = vadd.f32 %v308_v48, %v3782_v55  ;;  %v310_v63 = vpop.f32.mrb[11].mxu1 }
 0x137   :  { %4218 = vst [vmem:[#allocation23_spill] sm:$0xff] %v3825_v27  ;;  %4219 = vst [vmem:[#allocation24_spill] sm:$0xff] %v3828_v46  ;;  %v3835_v2 = vadd.f32 %v237_v52, %v111_v62  ;;  %v3838_v0 = vadd.f32 %v310_v63, %v3788_v58 }
 0x138   :  { %4220 = vst [vmem:[#allocation25_spill] sm:$0xff] %v3830_v50  ;;  %4221 = vst [vmem:[#allocation26_spill] sm:$0xff] %v3833_v4 }
 0x139   :  { %4222 = vst [vmem:[#allocation27_spill] sm:$0xff] %v3835_v2  ;;  %4223 = vst [vmem:[#allocation28_spill] sm:$0xff] %v3838_v0 }
 0x13b   :  { %v241_v9 = vpop.f32.mrb[12].mxu0  ;;  %v314_v5 = vpop.f32.mrb[12].mxu1 }
 0x13c   :  { %v3840_v27 = vadd.f32 %v241_v9, %v107_v59  ;;  %v243_v54 = vpop.f32.mrb[13].mxu0  ;;  %v3843_v11 = vadd.f32 %v314_v5, %v3782_v55  ;;  %v316_v43 = vpop.f32.mrb[13].mxu1 }
 0x13d   :  { %v3845_v50 = vadd.f32 %v243_v54, %v111_v62  ;;  %v245_v46 = vpop.f32.mrb[14].mxu0  ;;  %v3848_v48 = vadd.f32 %v316_v43, %v3788_v58  ;;  %v318_v52 = vpop.f32.mrb[14].mxu1  ;;  %v212_v54 = vadd.f32 %v3784_v56, %v107_v59  ;;  %v285_v43 = vadd.f32 %v3786_v57, %v3782_v55 }
 0x13e   :  { %4224 = vst [vmem:[#allocation29_spill] sm:$0xff] %v3840_v27  ;;  %4225 = vst [vmem:[#allocation30_spill] sm:$0xff] %v3843_v11  ;;  %v3850_v2 = vadd.f32 %v245_v46, %v107_v59  ;;  %v247_v63 = vpop.f32.mrb[15].mxu0  ;;  %v3853_v0 = vadd.f32 %v318_v52, %v3782_v55  ;;  %v320_v9 = vpop.f32.mrb[15].mxu1  ;;  %v287_v46 = vadd.f32 %v286_v61, %v3788_v58 }
 0x13f   :  { %4226 = vst [vmem:[#allocation31_spill] sm:$0xff] %v3845_v50  ;;  %4227 = vst [vmem:[#allocation32_spill] sm:$0xff] %v3848_v48  ;;  %v3855_v27 = vadd.f32 %v247_v63, %v111_v62  ;;  %v3858_v5 = vadd.f32 %v320_v9, %v3788_v58  ;;  %v214_v50 = vadd.f32 %v213_v60, %v111_v62  ;;  %v655_v62 = vld [vmem:[#allocation4] sm:$0xff] }
 0x140   :  { %4228 = vst [vmem:[#allocation33_spill] sm:$0xff] %v3850_v2  ;;  %4229 = vst [vmem:[#allocation34_spill] sm:$0xff] %v3853_v0 }
 0x141   :  { %4230 = vst [vmem:[#allocation35_spill] sm:$0xff] %v3855_v27  ;;  %4231 = vst [vmem:[#allocation36_spill] sm:$0xff] %v3858_v5 }
 0x143   :  { %v590_v48 = vpop.f32.mrb[16].mxu0 }
 0x144   :  { %v638_v2 = vadd.f32 %v590_v48, %v212_v54  ;;  %v631_v11 = vpop.f32.mrb[16].mxu1  ;;  %v592_v4 = vpop.f32.mrb[17].mxu0 }
 0x145   :  { %v640_v52 = vadd.f32 %v631_v11, %v285_v43  ;;  %v639_v0 = vadd.f32 %v592_v4, %v214_v50  ;;  %v633_v53 = vpop.f32.mrb[17].mxu1  ;;  %v594_v63 = vpop.f32.mrb[18].mxu0 }
 0x146   :  { %v642_v27 = vmul.f32 0.5, %v638_v2  ;;  %v641_v51 = vadd.f32 %v633_v53, %v287_v46  ;;  %v595_v9 = vpop.f32.mrb[19].mxu0  ;;  %v635_v5 = vpop.f32.mrb[18].mxu1  ;;  %v4232_v46 = vmov 0  }
 0x147   :  { %v646_v49 = vmul.f32 0.5, %v639_v0  ;;  %v636_v56 = vpop.f32.mrb[19].mxu1 }
 0x148   :  { %3347 = vtanh.f32 %v642_v27  ;;  %v651_v55 = vmul.f32 0.5, %v641_v51 }
 0x149   :  { %3349 = vtanh.f32 %v646_v49  ;;  %v668_v49 = vpop.permute.xlu0 %667 }
 0x14a   :  { %3351 = vtanh.f32 %v640_v52  ;;  %vm669_vm3 = vcmp.eq.s32.totalorder %v668_v49, 1 }
 0x14b   :  { %3353 = vtanh.f32 %v651_v55 }
 0x152   :  { %v3348_v57 = vpop.eup %3347 }
 0x153   :  { %v3350_v59 = vpop.eup %3349  ;;  %v644_v58 = vmul.f32 0.5, %v3348_v57 }
 0x154   :  { %v648_v60 = vmul.f32 0.5, %v3350_v59  ;;  %v3352_v4 = vpop.eup %3351 }
 0x155   :  { %v645_v61 = vadd.f32 0.5, %v644_v58  ;;  %v3354_v0 = vpop.eup %3353 }
 0x156   :  { %v649_v50 = vadd.f32 0.5, %v648_v60  ;;  %v653_v27 = vmul.f32 0.5, %v3354_v0 }
 0x157   :  { %v657_v11 = vmul.f32 %v3352_v4, %v645_v61 }
 0x158   :  { %v656_v2 = vmul.f32 %v655_v62, %v649_v50  ;;  %v654_v48 = vadd.f32 0.5, %v653_v27 }
 0x15a   :  { %v3864_v53 = vadd.f32 %v657_v11, %v656_v2 }
 0x15c   :  { %3355 = vtanh.f32 %v3864_v53 }
 0x166   :  { %v3356_v51 = vpop.eup %3355 }
 0x167   :  { %v660_v5 = vmul.f32 %v3356_v51, %v654_v48  ;;  %v986_v48 = vpop.permute.xlu0 %985 }
 0x168   :  { %vm987_vm5 = vcmp.eq.s32.totalorder %v986_v48, 1  ;;  %v4019_v48 = vld [vmem:[#allocation12 + $0xa8] ss:$16 sps:$4 sm:$0xff]  }
 0x169   :  { %v670_v54 = vsel %vm669_vm3, %v660_v5, 0.0  ;;  %v680_v43 = vpack.c.bf16 %v660_v5, %v660_v5 }
 0x16a   :  { %671 = vst [vmem:[#allocation13] sm:$0xff] %v670_v54 }
 0x16b   :  { %906 = vmatmul.mubr.bf16.vlgmr.msra.gmra.mrb[20].mxu0 %v680_v43  ;;  %947 = vmatmul.mubr.bf16.vlgmr.msra.gmra.mrb[20].mxu1 %v680_v43 }
 0x16c   :  { %1193 = vmatpush1.bf16.msra.mxu0 %v3622_v8  ;;  %1234 = vmatpush1.bf16.msra.mxu1 %v3626_v10  ;;  %v1302_v8 = vsel %vm3048_vm4, 1, %v4232_v46 }
 0x16d   :  { %1194 = vmatprep.subr.bf16.mxu0 %v3633_v12  ;;  %1235 = vmatprep.subr.bf16.mxu1 %v3639_v14 }
 0x16e   :  { %1224 = vmatprep.mubr.bf16.mxu0 %v4232_v46  ;;  %1265 = vmatprep.mubr.bf16.mxu1 %v4232_v46 }
 0x16f   :  { %1304 = vperm.xlu1 %3228, %v1302_v8  }
 0x170   :  { %1195 = vmatpush1.bf16.msra.mxu0 %v3637_v13  ;;  %1236 = vmatpush1.bf16.msra.mxu1 %v3643_v15 }
 0x171   :  { %1196 = vmatprep.subr.bf16.mxu0 %v3648_v17  ;;  %1237 = vmatprep.subr.bf16.mxu1 %v3653_v19 }
 0x174   :  { %1197 = vmatpush1.bf16.msra.mxu0 %v3651_v18  ;;  %1238 = vmatpush1.bf16.msra.mxu1 %v3657_v20 }
 0x175   :  { %1198 = vmatprep.subr.bf16.mxu0 %v3659_v21  ;;  %1239 = vmatprep.subr.bf16.mxu1 %v3664_v22 }
 0x178   :  { %1199 = vmatpush1.bf16.msra.mxu0 %v3667_v23  ;;  %1240 = vmatpush1.bf16.msra.mxu1 %v3672_v24 }
 0x179   :  { %1200 = vmatprep.subr.bf16.mxu0 %v3674_v25  ;;  %1241 = vmatprep.subr.bf16.mxu1 %v3678_v26 }
 0x17c   :  { %1201 = vmatpush1.bf16.msra.mxu0 %v3681_v28  ;;  %1242 = vmatpush1.bf16.msra.mxu1 %v3685_v29 }
 0x17d   :  { %1202 = vmatprep.subr.bf16.mxu0 %v3687_v30  ;;  %1243 = vmatprep.subr.bf16.mxu1 %v3690_v31 }
 0x180   :  { %1203 = vmatpush1.bf16.msra.mxu0 %v3694_v32  ;;  %1244 = vmatpush1.bf16.msra.mxu1 %v3697_v33 }
 0x181   :  { %1204 = vmatprep.subr.bf16.mxu0 %v3702_v34  ;;  %1245 = vmatprep.subr.bf16.mxu1 %v3706_v36 }
 0x184   :  { %1205 = vmatpush1.bf16.msra.mxu0 %v3708_v37  ;;  %1246 = vmatpush1.bf16.msra.mxu1 %v3710_v38 }
 0x185   :  { %1206 = vmatprep.subr.bf16.mxu0 %v3713_v39  ;;  %1247 = vmatprep.subr.bf16.mxu1 %v3715_v40 }
 0x188   :  { %1207 = vmatpush1.bf16.msra.mxu0 %v3726_v42  ;;  %1248 = vmatpush1.bf16.msra.mxu1 %v3730_v44 }
 0x23e   :  { %v907_v10 = vpop.f32.mrb[20].mxu0  ;;  %v948_v12 = vpop.f32.mrb[20].mxu1 }
 0x23f   :  { %v955_v13 = vadd.f32 %v907_v10, %v3790_v1  ;;  %v957_v14 = vadd.f32 %v948_v12, %v3793_v3  ;;  %v909_v15 = vpop.f32.mrb[21].mxu0  ;;  %v950_v52 = vpop.f32.mrb[21].mxu1  ;;  %v3913_v10 = vld [vmem:[#allocation12 + $0xc] ss:$16 sps:$4 sm:$0xff]   ;;  %v3915_v12 = vld [vmem:[#allocation12] ss:$16 sps:$4 sm:$0xff]  }
 0x240   :  { %v956_v63 = vadd.f32 %v909_v15, %v3795_v6  ;;  %v958_v9 = vadd.f32 %v950_v52, %v3798_v7  ;;  %v911_v56 = vpop.f32.mrb[22].mxu0  ;;  %v952_v55 = vpop.f32.mrb[22].mxu1  ;;  %1552 = vmatprep.subr.bf16.mxu1 %v3913_v10  ;;  %v3925_v15 = vld [vmem:[#allocation12 + $0x2c] ss:$16 sps:$4 sm:$0xff]   ;;  %v3927_v52 = vld [vmem:[#allocation12 + $0x20] ss:$16 sps:$4 sm:$0xff]  }
 0x241   :  { %v959_v57 = vmul.f32 0.5, %v955_v13  ;;  %v912_v59 = vpop.f32.mrb[23].mxu0  ;;  %v953_v58 = vpop.f32.mrb[23].mxu1  ;;  %v3917_v13 = vld [vmem:[#allocation12 + $0x8] ss:$16 sps:$4 sm:$0xff]  }
 0x242   :  { %v963_v60 = vmul.f32 0.5, %v956_v63  ;;  %v968_v61 = vmul.f32 0.5, %v958_v9  ;;  %v3929_v63 = vld [vmem:[#allocation12 + $0x28] ss:$16 sps:$4 sm:$0xff]   ;;  %v1305_v9 = vpop.permute.xlu1 %1304 }
 0x243   :  { %3357 = vtanh.f32 %v959_v57  ;;  %vm1306_vm7 = vcmp.eq.s32.totalorder %v1305_v9, 1 }
 0x244   :  { %3359 = vtanh.f32 %v963_v60  ;;  %v3979_v60 = vld [vmem:[#allocation12 + $0x44] ss:$16 sps:$4 sm:$0xff]  }
 0x245   :  { %3361 = vtanh.f32 %v957_v14  ;;  %v3923_v14 = vld [vmem:[#allocation12 + $0x24] ss:$16 sps:$4 sm:$0xff]  }
 0x246   :  { %3363 = vtanh.f32 %v968_v61  ;;  %v3981_v61 = vld [vmem:[#allocation12 + $0x4c] ss:$16 sps:$4 sm:$0xff]  }
 0x24d   :  { %v3358_v62 = vpop.eup %3357 }
 0x24e   :  { %v3360_v1 = vpop.eup %3359  ;;  %v961_v4 = vmul.f32 0.5, %v3358_v62  ;;  %v3983_v62 = vld [vmem:[#allocation12 + $0x40] ss:$16 sps:$4 sm:$0xff]  }
 0x24f   :  { %v965_v3 = vmul.f32 0.5, %v3360_v1  ;;  %v3362_v11 = vpop.eup %3361  ;;  %v3985_v1 = vld [vmem:[#allocation12 + $0x48] ss:$16 sps:$4 sm:$0xff]  }
 0x250   :  { %v962_v50 = vadd.f32 0.5, %v961_v4  ;;  %v3364_v27 = vpop.eup %3363  ;;  %v3991_v4 = vld [vmem:[#allocation12 + $0x64] ss:$16 sps:$4 sm:$0xff]  }
 0x251   :  { %v966_v6 = vadd.f32 0.5, %v965_v3  ;;  %v970_v49 = vmul.f32 0.5, %v3364_v27  ;;  %v3993_v3 = vld [vmem:[#allocation12 + $0x6c] ss:$16 sps:$4 sm:$0xff]   ;;  %v4013_v27 = vld [vmem:[#allocation12 + $0xa4] ss:$16 sps:$4 sm:$0xff]  }
 0x252   :  { %v974_v2 = vmul.f32 %v3362_v11, %v962_v50  ;;  %v3995_v50 = vld [vmem:[#allocation12 + $0x60] ss:$16 sps:$4 sm:$0xff]   ;;  %v3997_v11 = vld [vmem:[#allocation12 + $0x68] ss:$16 sps:$4 sm:$0xff]  }
 0x253   :  { %v973_v7 = vmul.f32 %v966_v6, %v3864_v53  ;;  %v971_v51 = vadd.f32 0.5, %v970_v49  ;;  %v3911_v53 = vld [vmem:[#allocation12 + $0x4] ss:$16 sps:$4 sm:$0xff]   ;;  %v4017_v49 = vld [vmem:[#allocation12 + $0xa0] ss:$16 sps:$4 sm:$0xff]  }
 0x254   :  { %1511 = vmatprep.subr.bf16.mxu0 %v3911_v53  ;;  %v4003_v6 = vld [vmem:[#allocation12 + $0x84] ss:$16 sps:$4 sm:$0xff]  }
 0x255   :  { %v3906_v0 = vadd.f32 %v974_v2, %v973_v7  ;;  %v4005_v2 = vld [vmem:[#allocation12 + $0x8c] ss:$16 sps:$4 sm:$0xff]   ;;  %v4007_v7 = vld [vmem:[#allocation12 + $0x80] ss:$16 sps:$4 sm:$0xff]  }
 0x257   :  { %3365 = vtanh.f32 %v3906_v0 }
 0x261   :  { %v3366_v5 = vpop.eup %3365 }
 0x262   :  { %v977_v54 = vmul.f32 %v3366_v5, %v971_v51  ;;  %v4021_v51 = vld [vmem:[#allocation12 + $0xac] ss:$16 sps:$4 sm:$0xff]   ;;  %v4027_v5 = vld [vmem:[#allocation12 + $0xc4] ss:$16 sps:$4 sm:$0xff]  }
 0x264   :  { %v988_v43 = vsel %vm987_vm5, %v977_v54, 0.0  ;;  %v999_v8 = vpack.c.bf16 %v977_v54, %v977_v54  ;;  %v4029_v54 = vld [vmem:[#allocation12 + $0xcc] ss:$16 sps:$4 sm:$0xff]  }
 0x265   :  { %990 = vst [vmem:[#allocation13 + $0x8] sm:$0xff] %v988_v43  ;;  %v4031_v43 = vld [vmem:[#allocation12 + $0xc0] ss:$16 sps:$4 sm:$0xff]  }
 0x266   :  { %1225 = vmatmul.mubr.bf16.vlgmr.msra.gmra.mrb[24].mxu0 %v999_v8  ;;  %1266 = vmatmul.mubr.bf16.vlgmr.msra.gmra.mrb[24].mxu1 %v999_v8  ;;  %v4033_v8 = vld [vmem:[#allocation12 + $0xc8] ss:$16 sps:$4 sm:$0xff]  }
 0x267   :  { %1543 = vmatprep.mubr.bf16.mxu0 %v4232_v46  ;;  %1584 = vmatprep.mubr.bf16.mxu1 %v4232_v46 }
 0x268   :  { %1512 = vmatpush1.bf16.msra.mxu0 %v3915_v12  ;;  %1553 = vmatpush1.bf16.msra.mxu1 %v3917_v13 }
 0x269   :  { %1513 = vmatprep.subr.bf16.mxu0 %v3923_v14  ;;  %1554 = vmatprep.subr.bf16.mxu1 %v3925_v15 }
 0x26c   :  { %1514 = vmatpush1.bf16.msra.mxu0 %v3927_v52  ;;  %1555 = vmatpush1.bf16.msra.mxu1 %v3929_v63 }
 0x26d   :  { %1515 = vmatprep.subr.bf16.mxu0 %v3648_v17  ;;  %1556 = vmatprep.subr.bf16.mxu1 %v3653_v19  ;;  %v1621_v17 = vsel %vm3081_vm6, 1, %v4232_v46 }
 0x26e   :  { %1623 = vperm.xlu1 %3228, %v1621_v17   ;;  %v4039_v17 = vld [vmem:[#allocation12 + $0xe4] ss:$16 sps:$4 sm:$0xff]  }
 0x270   :  { %1516 = vmatpush1.bf16.msra.mxu0 %v3651_v18  ;;  %1557 = vmatpush1.bf16.msra.mxu1 %v3657_v20 }
 0x271   :  { %1517 = vmatprep.subr.bf16.mxu0 %v3659_v21  ;;  %1558 = vmatprep.subr.bf16.mxu1 %v3664_v22 }
 0x274   :  { %1518 = vmatpush1.bf16.msra.mxu0 %v3667_v23  ;;  %1559 = vmatpush1.bf16.msra.mxu1 %v3672_v24 }
 0x275   :  { %1519 = vmatprep.subr.bf16.mxu0 %v3674_v25  ;;  %1560 = vmatprep.subr.bf16.mxu1 %v3678_v26 }
 0x278   :  { %1520 = vmatpush1.bf16.msra.mxu0 %v3681_v28  ;;  %1561 = vmatpush1.bf16.msra.mxu1 %v3685_v29 }
 0x279   :  { %1521 = vmatprep.subr.bf16.mxu0 %v3687_v30  ;;  %1562 = vmatprep.subr.bf16.mxu1 %v3690_v31 }
 0x27c   :  { %1522 = vmatpush1.bf16.msra.mxu0 %v3694_v32  ;;  %1563 = vmatpush1.bf16.msra.mxu1 %v3697_v33 }
 0x27d   :  { %1523 = vmatprep.subr.bf16.mxu0 %v3702_v34  ;;  %1564 = vmatprep.subr.bf16.mxu1 %v3706_v36 }
 0x280   :  { %1524 = vmatpush1.bf16.msra.mxu0 %v3708_v37  ;;  %1565 = vmatpush1.bf16.msra.mxu1 %v3710_v38 }
 0x281   :  { %1525 = vmatprep.subr.bf16.mxu0 %v3713_v39  ;;  %1566 = vmatprep.subr.bf16.mxu1 %v3715_v40 }
 0x284   :  { %1526 = vmatpush1.bf16.msra.mxu0 %v3726_v42  ;;  %1567 = vmatpush1.bf16.msra.mxu1 %v3730_v44 }
 0x285   :  { %1830 = vmatprep.subr.bf16.mxu0 %v3911_v53  ;;  %1871 = vmatprep.subr.bf16.mxu1 %v3913_v10 }
 0x339   :  { %v1226_v18 = vpop.f32.mrb[24].mxu0  ;;  %v1267_v19 = vpop.f32.mrb[24].mxu1 }
 0x33a   :  { %v1274_v20 = vadd.f32 %v1226_v18, %v3800_v16  ;;  %v1276_v21 = vadd.f32 %v1267_v19, %v3803_v35  ;;  %v1228_v22 = vpop.f32.mrb[25].mxu0  ;;  %v1269_v23 = vpop.f32.mrb[25].mxu1  ;;  %v4041_v18 = vld [vmem:[#allocation12 + $0xec] ss:$16 sps:$4 sm:$0xff]   ;;  %v4043_v19 = vld [vmem:[#allocation12 + $0xe0] ss:$16 sps:$4 sm:$0xff]  }
 0x33b   :  { %v1275_v24 = vadd.f32 %v1228_v22, %v3805_v45  ;;  %v1277_v25 = vadd.f32 %v1269_v23, %v3808_v47  ;;  %v1230_v26 = vpop.f32.mrb[26].mxu0  ;;  %v1271_v28 = vpop.f32.mrb[26].mxu1 }
 0x33c   :  { %v1278_v29 = vmul.f32 0.5, %v1274_v20  ;;  %v1231_v30 = vpop.f32.mrb[27].mxu0  ;;  %v1272_v31 = vpop.f32.mrb[27].mxu1  ;;  %v4045_v20 = vld [vmem:[#allocation12 + $0xe8] ss:$16 sps:$4 sm:$0xff]  }
 0x33d   :  { %v1282_v32 = vmul.f32 0.5, %v1275_v24  ;;  %v1287_v33 = vmul.f32 0.5, %v1277_v25  ;;  %v4233_v24 = vld [vmem:[#allocation17_spill] sm:$0xff]  ;;  %v4234_v26 = vld [vmem:[#allocation18_spill] sm:$0xff]  ;;  %v4235_v31 = vld [vmem:[#allocation19_spill] sm:$0xff] }
 0x33e   :  { %3367 = vtanh.f32 %v1278_v29 }
 0x33f   :  { %3369 = vtanh.f32 %v1282_v32 }
 0x340   :  { %3371 = vtanh.f32 %v1276_v21  ;;  %v1940_v21 = vsel %vm3114_vm8, 1, %v4232_v46 }
 0x341   :  { %3373 = vtanh.f32 %v1287_v33  ;;  %1942 = vperm.xlu0 %3227, %v1940_v21   ;;  %v4236_v33 = vld [vmem:[#allocation20_spill] sm:$0xff] }
 0x348   :  { %v3368_v34 = vpop.eup %3367 }
 0x349   :  { %v3370_v36 = vpop.eup %3369  ;;  %v1280_v37 = vmul.f32 0.5, %v3368_v34 }
 0x34a   :  { %v1284_v38 = vmul.f32 0.5, %v3370_v36  ;;  %v3372_v40 = vpop.eup %3371 }
 0x34b   :  { %v1281_v39 = vadd.f32 0.5, %v1280_v37  ;;  %v3374_v45 = vpop.eup %3373 }
 0x34c   :  { %v1285_v42 = vadd.f32 0.5, %v1284_v38  ;;  %v1289_v47 = vmul.f32 0.5, %v3374_v45 }
 0x34d   :  { %v1293_v44 = vmul.f32 %v3372_v40, %v1281_v39 }
 0x34e   :  { %v1292_v16 = vmul.f32 %v1285_v42, %v3906_v0  ;;  %v1290_v56 = vadd.f32 0.5, %v1289_v47  ;;  %v4009_v0 = vld [vmem:[#allocation12 + $0x88] ss:$16 sps:$4 sm:$0xff]  }
 0x350   :  { %v3968_v35 = vadd.f32 %v1293_v44, %v1292_v16 }
 0x352   :  { %3375 = vtanh.f32 %v3968_v35 }
 0x35c   :  { %v3376_v55 = vpop.eup %3375 }
 0x35d   :  { %v1296_v57 = vmul.f32 %v3376_v55, %v1290_v56 }
 0x35f   :  { %v1307_v59 = vsel %vm1306_vm7, %v1296_v57, 0.0  ;;  %v1318_v58 = vpack.c.bf16 %v1296_v57, %v1296_v57 }
 0x360   :  { %1309 = vst [vmem:[#allocation13 + $0x10] sm:$0xff] %v1307_v59 }
 0x361   :  { %1544 = vmatmul.mubr.bf16.vlgmr.msra.gmra.mrb[28].mxu0 %v1318_v58  ;;  %1585 = vmatmul.mubr.bf16.vlgmr.msra.gmra.mrb[28].mxu1 %v1318_v58 }
 0x362   :  { %1831 = vmatpush1.bf16.msra.mxu0 %v3915_v12  ;;  %1872 = vmatpush1.bf16.msra.mxu1 %v3917_v13 }
 0x363   :  { %1832 = vmatprep.subr.bf16.mxu0 %v3923_v14  ;;  %1873 = vmatprep.subr.bf16.mxu1 %v3925_v15 }
 0x364   :  { %1862 = vmatprep.mubr.bf16.mxu0 %v4232_v46  ;;  %1903 = vmatprep.mubr.bf16.mxu1 %v4232_v46 }
 0x366   :  { %1833 = vmatpush1.bf16.msra.mxu0 %v3927_v52  ;;  %1874 = vmatpush1.bf16.msra.mxu1 %v3929_v63 }
 0x367   :  { %1834 = vmatprep.subr.bf16.mxu0 %v3979_v60  ;;  %1875 = vmatprep.subr.bf16.mxu1 %v3981_v61 }
 0x36a   :  { %1835 = vmatpush1.bf16.msra.mxu0 %v3983_v62  ;;  %1876 = vmatpush1.bf16.msra.mxu1 %v3985_v1 }
 0x36b   :  { %1836 = vmatprep.subr.bf16.mxu0 %v3991_v4  ;;  %1877 = vmatprep.subr.bf16.mxu1 %v3993_v3 }
 0x36e   :  { %1837 = vmatpush1.bf16.msra.mxu0 %v3995_v50  ;;  %1878 = vmatpush1.bf16.msra.mxu1 %v3997_v11 }
 0x36f   :  { %1838 = vmatprep.subr.bf16.mxu0 %v4003_v6  ;;  %1879 = vmatprep.subr.bf16.mxu1 %v4005_v2 }
 0x372   :  { %1839 = vmatpush1.bf16.msra.mxu0 %v4007_v7  ;;  %1880 = vmatpush1.bf16.msra.mxu1 %v4009_v0 }
 0x373   :  { %1840 = vmatprep.subr.bf16.mxu0 %v4013_v27  ;;  %1881 = vmatprep.subr.bf16.mxu1 %v4021_v51 }
 0x376   :  { %1841 = vmatpush1.bf16.msra.mxu0 %v4017_v49  ;;  %1882 = vmatpush1.bf16.msra.mxu1 %v4019_v48 }
 0x377   :  { %1842 = vmatprep.subr.bf16.mxu0 %v4027_v5  ;;  %1883 = vmatprep.subr.bf16.mxu1 %v4029_v54 }
 0x37a   :  { %1843 = vmatpush1.bf16.msra.mxu0 %v4031_v43  ;;  %1884 = vmatpush1.bf16.msra.mxu1 %v4033_v8 }
 0x37b   :  { %1844 = vmatprep.subr.bf16.mxu0 %v4039_v17  ;;  %1885 = vmatprep.subr.bf16.mxu1 %v4041_v18 }
 0x37e   :  { %1845 = vmatpush1.bf16.msra.mxu0 %v4043_v19  ;;  %1886 = vmatpush1.bf16.msra.mxu1 %v4045_v20 }
 0x37f   :  { %2149 = vmatprep.subr.bf16.mxu0 %v3911_v53  ;;  %2190 = vmatprep.subr.bf16.mxu1 %v3913_v10 }
 0x434   :  { %v1545_v22 = vpop.f32.mrb[28].mxu0  ;;  %v1586_v23 = vpop.f32.mrb[28].mxu1 }
 0x435   :  { %v1593_v25 = vadd.f32 %v1545_v22, %v4233_v24  ;;  %v1595_v28 = vadd.f32 %v1586_v23, %v4234_v26  ;;  %v1547_v29 = vpop.f32.mrb[29].mxu0  ;;  %v1588_v30 = vpop.f32.mrb[29].mxu1 }
 0x436   :  { %v1594_v32 = vadd.f32 %v1547_v29, %v4235_v31  ;;  %v1596_v34 = vadd.f32 %v1588_v30, %v4236_v33  ;;  %v1549_v36 = vpop.f32.mrb[30].mxu0  ;;  %v1590_v37 = vpop.f32.mrb[30].mxu1  ;;  %v4237_v33 = vld [vmem:[#allocation21_spill] sm:$0xff] }
 0x437   :  { %v1597_v38 = vmul.f32 0.5, %v1593_v25  ;;  %v1550_v39 = vpop.f32.mrb[31].mxu0  ;;  %v1591_v41 = vpop.f32.mrb[31].mxu1  ;;  %v4238_v36 = vld [vmem:[#allocation22_spill] sm:$0xff] }
 0x438   :  { %v1601_v40 = vmul.f32 0.5, %v1594_v32  ;;  %v1606_v42 = vmul.f32 0.5, %v1596_v34  ;;  %v1624_v23 = vpop.permute.xlu1 %1623  ;;  %v4239_v39 = vld [vmem:[#allocation23_spill] sm:$0xff]  ;;  %v4240_v41 = vld [vmem:[#allocation24_spill] sm:$0xff] }
 0x439   :  { %3377 = vtanh.f32 %v1597_v38  ;;  %vm1625_vm9 = vcmp.eq.s32.totalorder %v1624_v23, 1 }
 0x43a   :  { %3379 = vtanh.f32 %v1601_v40 }
 0x43b   :  { %3381 = vtanh.f32 %v1595_v28 }
 0x43c   :  { %3383 = vtanh.f32 %v1606_v42 }
 0x443   :  { %v3378_v44 = vpop.eup %3377 }
 0x444   :  { %v3380_v16 = vpop.eup %3379  ;;  %v1599_v45 = vmul.f32 0.5, %v3378_v44 }
 0x445   :  { %v1603_v47 = vmul.f32 0.5, %v3380_v16  ;;  %v3382_v56 = vpop.eup %3381 }
 0x446   :  { %v1600_v9 = vadd.f32 0.5, %v1599_v45  ;;  %v3384_v21 = vpop.eup %3383 }
 0x447   :  { %v1604_v55 = vadd.f32 0.5, %v1603_v47  ;;  %v1608_v22 = vmul.f32 0.5, %v3384_v21 }
 0x448   :  { %v1612_v57 = vmul.f32 %v3382_v56, %v1600_v9 }
 0x449   :  { %v1611_v59 = vmul.f32 %v1604_v55, %v3968_v35  ;;  %v1609_v24 = vadd.f32 0.5, %v1608_v22  ;;  %v4100_v35 = vld [vmem:[%s4208_s5] sm:$0xff] }
 0x44a   :  { %vm3147_vm10 = vcmp.gt.s32.totalorder %v4100_v35, 5  ;;  %vm3180_vm12 = vcmp.gt.s32.totalorder %v4100_v35, 6  ;;  %vm3213_vm14 = vcmp.gt.s32.totalorder %v4100_v35, 7 }
 0x44b   :  { %v4060_v58 = vadd.f32 %v1612_v57, %v1611_v59  ;;  %v2259_v30 = vsel %vm3147_vm10, 1, %v4232_v46 }
 0x44c   :  { %2261 = vperm.xlu1 %3228, %v2259_v30  }
 0x44d   :  { %3385 = vtanh.f32 %v4060_v58 }
 0x457   :  { %v3386_v25 = vpop.eup %3385 }
 0x458   :  { %v1615_v26 = vmul.f32 %v3386_v25, %v1609_v24 }
 0x45a   :  { %v1626_v28 = vsel %vm1625_vm9, %v1615_v26, 0.0  ;;  %v1637_v29 = vpack.c.bf16 %v1615_v26, %v1615_v26 }
 0x45b   :  { %1628 = vst [vmem:[#allocation13 + $0x18] sm:$0xff] %v1626_v28 }
 0x45c   :  { %1863 = vmatmul.mubr.bf16.vlgmr.msra.gmra.mrb[32].mxu0 %v1637_v29  ;;  %1904 = vmatmul.mubr.bf16.vlgmr.msra.gmra.mrb[32].mxu1 %v1637_v29 }
 0x45d   :  { %2150 = vmatpush1.bf16.msra.mxu0 %v3915_v12  ;;  %2191 = vmatpush1.bf16.msra.mxu1 %v3917_v13 }
 0x45e   :  { %2151 = vmatprep.subr.bf16.mxu0 %v3923_v14  ;;  %2192 = vmatprep.subr.bf16.mxu1 %v3925_v15 }
 0x45f   :  { %2181 = vmatprep.mubr.bf16.mxu0 %v4232_v46  ;;  %2222 = vmatprep.mubr.bf16.mxu1 %v4232_v46 }
 0x461   :  { %2152 = vmatpush1.bf16.msra.mxu0 %v3927_v52  ;;  %2193 = vmatpush1.bf16.msra.mxu1 %v3929_v63 }
 0x462   :  { %2153 = vmatprep.subr.bf16.mxu0 %v3979_v60  ;;  %2194 = vmatprep.subr.bf16.mxu1 %v3981_v61 }
 0x465   :  { %2154 = vmatpush1.bf16.msra.mxu0 %v3983_v62  ;;  %2195 = vmatpush1.bf16.msra.mxu1 %v3985_v1 }
 0x466   :  { %2155 = vmatprep.subr.bf16.mxu0 %v3991_v4  ;;  %2196 = vmatprep.subr.bf16.mxu1 %v3993_v3 }
 0x469   :  { %2156 = vmatpush1.bf16.msra.mxu0 %v3995_v50  ;;  %2197 = vmatpush1.bf16.msra.mxu1 %v3997_v11 }
 0x46a   :  { %2157 = vmatprep.subr.bf16.mxu0 %v4003_v6  ;;  %2198 = vmatprep.subr.bf16.mxu1 %v4005_v2 }
 0x46d   :  { %2158 = vmatpush1.bf16.msra.mxu0 %v4007_v7  ;;  %2199 = vmatpush1.bf16.msra.mxu1 %v4009_v0 }
 0x46e   :  { %2159 = vmatprep.subr.bf16.mxu0 %v4013_v27  ;;  %2200 = vmatprep.subr.bf16.mxu1 %v4021_v51 }
 0x471   :  { %2160 = vmatpush1.bf16.msra.mxu0 %v4017_v49  ;;  %2201 = vmatpush1.bf16.msra.mxu1 %v4019_v48 }
 0x472   :  { %2161 = vmatprep.subr.bf16.mxu0 %v4027_v5  ;;  %2202 = vmatprep.subr.bf16.mxu1 %v4029_v54 }
 0x475   :  { %2162 = vmatpush1.bf16.msra.mxu0 %v4031_v43  ;;  %2203 = vmatpush1.bf16.msra.mxu1 %v4033_v8 }
 0x476   :  { %2163 = vmatprep.subr.bf16.mxu0 %v4039_v17  ;;  %2204 = vmatprep.subr.bf16.mxu1 %v4041_v18 }
 0x479   :  { %2164 = vmatpush1.bf16.msra.mxu0 %v4043_v19  ;;  %2205 = vmatpush1.bf16.msra.mxu1 %v4045_v20 }
 0x47a   :  { %2468 = vmatprep.subr.bf16.mxu0 %v3911_v53  ;;  %2509 = vmatprep.subr.bf16.mxu1 %v3913_v10 }
 0x52f   :  { %v1864_v31 = vpop.f32.mrb[32].mxu0  ;;  %v1905_v32 = vpop.f32.mrb[32].mxu1 }
 0x530   :  { %v1912_v34 = vadd.f32 %v1864_v31, %v4237_v33  ;;  %v1914_v37 = vadd.f32 %v1905_v32, %v4238_v36  ;;  %v1866_v38 = vpop.f32.mrb[33].mxu0  ;;  %v1907_v53 = vpop.f32.mrb[33].mxu1 }
 0x531   :  { %v1913_v10 = vadd.f32 %v1866_v38, %v4239_v39  ;;  %v1915_v40 = vadd.f32 %v1907_v53, %v4240_v41  ;;  %v1868_v42 = vpop.f32.mrb[34].mxu0  ;;  %v1909_v44 = vpop.f32.mrb[34].mxu1  ;;  %v4243_v39 = vld [vmem:[#allocation27_spill] sm:$0xff]  ;;  %v4244_v41 = vld [vmem:[#allocation28_spill] sm:$0xff] }
 0x532   :  { %v1916_v16 = vmul.f32 0.5, %v1912_v34  ;;  %v1869_v45 = vpop.f32.mrb[35].mxu0  ;;  %v1910_v47 = vpop.f32.mrb[35].mxu1 }
 0x533   :  { %v1920_v9 = vmul.f32 0.5, %v1913_v10  ;;  %v1925_v56 = vmul.f32 0.5, %v1915_v40  ;;  %v1943_v31 = vpop.permute.xlu0 %1942 }
 0x534   :  { %3387 = vtanh.f32 %v1916_v16  ;;  %vm1944_vm11 = vcmp.eq.s32.totalorder %v1943_v31, 1 }
 0x535   :  { %3389 = vtanh.f32 %v1920_v9 }
 0x536   :  { %3391 = vtanh.f32 %v1914_v37 }
 0x537   :  { %3393 = vtanh.f32 %v1925_v56 }
 0x53e   :  { %v3388_v55 = vpop.eup %3387 }
 0x53f   :  { %v3390_v57 = vpop.eup %3389  ;;  %v1918_v59 = vmul.f32 0.5, %v3388_v55 }
 0x540   :  { %v1922_v21 = vmul.f32 0.5, %v3390_v57  ;;  %v3392_v23 = vpop.eup %3391 }
 0x541   :  { %v1919_v22 = vadd.f32 0.5, %v1918_v59  ;;  %v3394_v29 = vpop.eup %3393 }
 0x542   :  { %v1923_v24 = vadd.f32 0.5, %v1922_v21  ;;  %v1927_v30 = vmul.f32 0.5, %v3394_v29 }
 0x543   :  { %v1931_v25 = vmul.f32 %v3392_v23, %v1919_v22 }
 0x544   :  { %v1930_v26 = vmul.f32 %v1923_v24, %v4060_v58  ;;  %v1928_v32 = vadd.f32 0.5, %v1927_v30 }
 0x546   :  { %v4109_v28 = vadd.f32 %v1931_v25, %v1930_v26 }
 0x548   :  { %3395 = vtanh.f32 %v4109_v28 }
 0x552   :  { %v3396_v33 = vpop.eup %3395 }
 0x553   :  { %v1934_v34 = vmul.f32 %v3396_v33, %v1928_v32  ;;  %v2262_v32 = vpop.permute.xlu1 %2261 }
 0x554   :  { %vm2263_vm13 = vcmp.eq.s32.totalorder %v2262_v32, 1 }
 0x555   :  { %v1945_v36 = vsel %vm1944_vm11, %v1934_v34, 0.0  ;;  %v1956_v37 = vpack.c.bf16 %v1934_v34, %v1934_v34 }
 0x556   :  { %1947 = vst [vmem:[#allocation13 + $0x20] sm:$0xff] %v1945_v36 }
 0x557   :  { %2182 = vmatmul.mubr.bf16.vlgmr.msra.gmra.mrb[36].mxu0 %v1956_v37  ;;  %2223 = vmatmul.mubr.bf16.vlgmr.msra.gmra.mrb[36].mxu1 %v1956_v37 }
 0x558   :  { %2469 = vmatpush1.bf16.msra.mxu0 %v3915_v12  ;;  %2510 = vmatpush1.bf16.msra.mxu1 %v3917_v13  ;;  %v2578_v12 = vsel %vm3180_vm12, 1, %v4232_v46 }
 0x559   :  { %2470 = vmatprep.subr.bf16.mxu0 %v3923_v14  ;;  %2511 = vmatprep.subr.bf16.mxu1 %v3925_v15  ;;  %v4241_v15 = vld [vmem:[#allocation25_spill] sm:$0xff] }
 0x55a   :  { %2500 = vmatprep.mubr.bf16.mxu0 %v4232_v46  ;;  %2541 = vmatprep.mubr.bf16.mxu1 %v4232_v46 }
 0x55b   :  { %2580 = vperm.xlu0 %3227, %v2578_v12  }
 0x55c   :  { %2471 = vmatpush1.bf16.msra.mxu0 %v3927_v52  ;;  %2512 = vmatpush1.bf16.msra.mxu1 %v3929_v63  ;;  %v4242_v63 = vld [vmem:[#allocation26_spill] sm:$0xff] }
 0x55d   :  { %2472 = vmatprep.subr.bf16.mxu0 %v3979_v60  ;;  %2513 = vmatprep.subr.bf16.mxu1 %v3981_v61 }
 0x560   :  { %2473 = vmatpush1.bf16.msra.mxu0 %v3983_v62  ;;  %2514 = vmatpush1.bf16.msra.mxu1 %v3985_v1 }
 0x561   :  { %2474 = vmatprep.subr.bf16.mxu0 %v3991_v4  ;;  %2515 = vmatprep.subr.bf16.mxu1 %v3993_v3 }
 0x564   :  { %2475 = vmatpush1.bf16.msra.mxu0 %v3995_v50  ;;  %2516 = vmatpush1.bf16.msra.mxu1 %v3997_v11 }
 0x565   :  { %2476 = vmatprep.subr.bf16.mxu0 %v4003_v6  ;;  %2517 = vmatprep.subr.bf16.mxu1 %v4005_v2 }
 0x568   :  { %2477 = vmatpush1.bf16.msra.mxu0 %v4007_v7  ;;  %2518 = vmatpush1.bf16.msra.mxu1 %v4009_v0 }
 0x569   :  { %2478 = vmatprep.subr.bf16.mxu0 %v4013_v27  ;;  %2519 = vmatprep.subr.bf16.mxu1 %v4021_v51 }
 0x56c   :  { %2479 = vmatpush1.bf16.msra.mxu0 %v4017_v49  ;;  %2520 = vmatpush1.bf16.msra.mxu1 %v4019_v48 }
 0x56d   :  { %2480 = vmatprep.subr.bf16.mxu0 %v4027_v5  ;;  %2521 = vmatprep.subr.bf16.mxu1 %v4029_v54 }
 0x570   :  { %2481 = vmatpush1.bf16.msra.mxu0 %v4031_v43  ;;  %2522 = vmatpush1.bf16.msra.mxu1 %v4033_v8 }
 0x571   :  { %2482 = vmatprep.subr.bf16.mxu0 %v4039_v17  ;;  %2523 = vmatprep.subr.bf16.mxu1 %v4041_v18 }
 0x574   :  { %2483 = vmatpush1.bf16.msra.mxu0 %v4043_v19  ;;  %2524 = vmatpush1.bf16.msra.mxu1 %v4045_v20 }
 0x62a   :  { %v2183_v13 = vpop.f32.mrb[36].mxu0  ;;  %v2224_v14 = vpop.f32.mrb[36].mxu1 }
 0x62b   :  { %v2231_v52 = vadd.f32 %v2183_v13, %v4241_v15  ;;  %v2233_v58 = vadd.f32 %v2224_v14, %v4242_v63  ;;  %v2185_v38 = vpop.f32.mrb[37].mxu0  ;;  %v2226_v53 = vpop.f32.mrb[37].mxu1  ;;  %v3340_v13 = vld [vmem:[#allocation12 + $0xc] ss:$16 sps:$4 sm:$0xff]   ;;  %v3335_v14 = vld [vmem:[#allocation12] ss:$16 sps:$4 sm:$0xff]  }
 0x62c   :  { %v2232_v10 = vadd.f32 %v2185_v38, %v4243_v39  ;;  %v2234_v40 = vadd.f32 %v2226_v53, %v4244_v41  ;;  %v2187_v42 = vpop.f32.mrb[38].mxu0  ;;  %v2228_v44 = vpop.f32.mrb[38].mxu1  ;;  %v3338_v15 = vld [vmem:[#allocation12 + $0x8] ss:$16 sps:$4 sm:$0xff]   ;;  %2828 = vmatprep.subr.bf16.mxu1 %v3340_v13  ;;  %v3346_v63 = vld [vmem:[#allocation12 + $0x2c] ss:$16 sps:$4 sm:$0xff]  }
 0x62d   :  { %v2235_v16 = vmul.f32 0.5, %v2231_v52  ;;  %v2188_v45 = vpop.f32.mrb[39].mxu0  ;;  %v2229_v47 = vpop.f32.mrb[39].mxu1  ;;  %v3343_v52 = vld [vmem:[#allocation12 + $0x24] ss:$16 sps:$4 sm:$0xff]  }
 0x62e   :  { %v2239_v9 = vmul.f32 0.5, %v2232_v10  ;;  %v2244_v56 = vmul.f32 0.5, %v2234_v40  ;;  %v3344_v38 = vld [vmem:[#allocation12 + $0x28] ss:$16 sps:$4 sm:$0xff]   ;;  %v2581_v44 = vpop.permute.xlu0 %2580 }
 0x62f   :  { %3397 = vtanh.f32 %v2235_v16  ;;  %vm2582_vm15 = vcmp.eq.s32.totalorder %v2581_v44, 1 }
 0x630   :  { %3399 = vtanh.f32 %v2239_v9 }
 0x631   :  { %3401 = vtanh.f32 %v2233_v58  ;;  %v3341_v58 = vld [vmem:[#allocation12 + $0x20] ss:$16 sps:$4 sm:$0xff]  }
 0x632   :  { %3403 = vtanh.f32 %v2244_v56 }
 0x639   :  { %v3398_v55 = vpop.eup %3397 }
 0x63a   :  { %v3400_v57 = vpop.eup %3399  ;;  %v2237_v59 = vmul.f32 0.5, %v3398_v55 }
 0x63b   :  { %v2241_v21 = vmul.f32 0.5, %v3400_v57  ;;  %v3402_v23 = vpop.eup %3401 }
 0x63c   :  { %v2238_v22 = vadd.f32 0.5, %v2237_v59  ;;  %v3404_v30 = vpop.eup %3403  ;;  %v4249_v59 = vld [vmem:[#allocation33_spill] sm:$0xff] }
 0x63d   :  { %v2242_v24 = vadd.f32 0.5, %v2241_v21  ;;  %v2246_v31 = vmul.f32 0.5, %v3404_v30  ;;  %v4252_v30 = vld [vmem:[#allocation36_spill] sm:$0xff] }
 0x63e   :  { %v2250_v25 = vmul.f32 %v3402_v23, %v2238_v22  ;;  %v4250_v22 = vld [vmem:[#allocation34_spill] sm:$0xff] }
 0x63f   :  { %v2249_v26 = vmul.f32 %v2242_v24, %v4109_v28  ;;  %v2247_v33 = vadd.f32 0.5, %v2246_v31  ;;  %v3337_v28 = vld [vmem:[#allocation12 + $0x4] ss:$16 sps:$4 sm:$0xff]  }
 0x640   :  { %2787 = vmatprep.subr.bf16.mxu0 %v3337_v28 }
 0x641   :  { %v4151_v29 = vadd.f32 %v2250_v25, %v2249_v26  ;;  %v4251_v26 = vld [vmem:[#allocation35_spill] sm:$0xff] }
 0x643   :  { %3405 = vtanh.f32 %v4151_v29 }
 0x64d   :  { %v3406_v34 = vpop.eup %3405 }
 0x64e   :  { %v2253_v36 = vmul.f32 %v3406_v34, %v2247_v33 }
 0x650   :  { %v2264_v37 = vsel %vm2263_vm13, %v2253_v36, 0.0  ;;  %v2275_v12 = vpack.c.bf16 %v2253_v36, %v2253_v36 }
 0x651   :  { %2266 = vst [vmem:[#allocation13 + $0x28] sm:$0xff] %v2264_v37 }
 0x652   :  { %2501 = vmatmul.mubr.bf16.vlgmr.msra.gmra.mrb[40].mxu0 %v2275_v12  ;;  %2542 = vmatmul.mubr.bf16.vlgmr.msra.gmra.mrb[40].mxu1 %v2275_v12 }
 0x653   :  { %2819 = vmatprep.mubr.bf16.mxu0 %v4232_v46  ;;  %2860 = vmatprep.mubr.bf16.mxu1 %v4232_v46 }
 0x654   :  { %2788 = vmatpush1.bf16.msra.mxu0 %v3335_v14  ;;  %2829 = vmatpush1.bf16.msra.mxu1 %v3338_v15 }
 0x655   :  { %2789 = vmatprep.subr.bf16.mxu0 %v3343_v52  ;;  %2830 = vmatprep.subr.bf16.mxu1 %v3346_v63 }
 0x658   :  { %2790 = vmatpush1.bf16.msra.mxu0 %v3341_v58  ;;  %2831 = vmatpush1.bf16.msra.mxu1 %v3344_v38 }
 0x659   :  { %2791 = vmatprep.subr.bf16.mxu0 %v3979_v60  ;;  %2832 = vmatprep.subr.bf16.mxu1 %v3981_v61  ;;  %v2897_v60 = vsel %vm3213_vm14, 1, %v4232_v46 }
 0x65a   :  { %2899 = vperm.xlu1 %3228, %v2897_v60  }
 0x65c   :  { %2792 = vmatpush1.bf16.msra.mxu0 %v3983_v62  ;;  %2833 = vmatpush1.bf16.msra.mxu1 %v3985_v1  ;;  %v4245_v1 = vld [vmem:[#allocation29_spill] sm:$0xff] }
 0x65d   :  { %2793 = vmatprep.subr.bf16.mxu0 %v3991_v4  ;;  %2834 = vmatprep.subr.bf16.mxu1 %v3993_v3  ;;  %v4246_v3 = vld [vmem:[#allocation30_spill] sm:$0xff] }
 0x660   :  { %2794 = vmatpush1.bf16.msra.mxu0 %v3995_v50  ;;  %2835 = vmatpush1.bf16.msra.mxu1 %v3997_v11 }
 0x661   :  { %2795 = vmatprep.subr.bf16.mxu0 %v4003_v6  ;;  %2836 = vmatprep.subr.bf16.mxu1 %v4005_v2  ;;  %v4247_v2 = vld [vmem:[#allocation31_spill] sm:$0xff] }
 0x664   :  { %2796 = vmatpush1.bf16.msra.mxu0 %v4007_v7  ;;  %2837 = vmatpush1.bf16.msra.mxu1 %v4009_v0  ;;  %v4248_v0 = vld [vmem:[#allocation32_spill] sm:$0xff] }
 0x665   :  { %2797 = vmatprep.subr.bf16.mxu0 %v4013_v27  ;;  %2838 = vmatprep.subr.bf16.mxu1 %v4021_v51 }
 0x668   :  { %2798 = vmatpush1.bf16.msra.mxu0 %v4017_v49  ;;  %2839 = vmatpush1.bf16.msra.mxu1 %v4019_v48 }
 0x669   :  { %2799 = vmatprep.subr.bf16.mxu0 %v4027_v5  ;;  %2840 = vmatprep.subr.bf16.mxu1 %v4029_v54 }
 0x66c   :  { %2800 = vmatpush1.bf16.msra.mxu0 %v4031_v43  ;;  %2841 = vmatpush1.bf16.msra.mxu1 %v4033_v8 }
 0x66d   :  { %2801 = vmatprep.subr.bf16.mxu0 %v4039_v17  ;;  %2842 = vmatprep.subr.bf16.mxu1 %v4041_v18 }
 0x670   :  { %2802 = vmatpush1.bf16.msra.mxu0 %v4043_v19  ;;  %2843 = vmatpush1.bf16.msra.mxu1 %v4045_v20 }
 0x725   :  { %v2502_v61 = vpop.f32.mrb[40].mxu0  ;;  %v2543_v62 = vpop.f32.mrb[40].mxu1 }
 0x726   :  { %v2550_v4 = vadd.f32 %v2502_v61, %v4245_v1  ;;  %v2552_v50 = vadd.f32 %v2543_v62, %v4246_v3  ;;  %v2504_v11 = vpop.f32.mrb[41].mxu0  ;;  %v2545_v6 = vpop.f32.mrb[41].mxu1 }
 0x727   :  { %v2551_v7 = vadd.f32 %v2504_v11, %v4247_v2  ;;  %v2553_v27 = vadd.f32 %v2545_v6, %v4248_v0  ;;  %v2506_v49 = vpop.f32.mrb[42].mxu0  ;;  %v2547_v48 = vpop.f32.mrb[42].mxu1 }
 0x728   :  { %v2554_v51 = vmul.f32 0.5, %v2550_v4  ;;  %v2507_v5 = vpop.f32.mrb[43].mxu0  ;;  %v2548_v54 = vpop.f32.mrb[43].mxu1 }
 0x729   :  { %v2558_v43 = vmul.f32 0.5, %v2551_v7  ;;  %v2563_v46 = vmul.f32 0.5, %v2553_v27 }
 0x72a   :  { %3407 = vtanh.f32 %v2554_v51 }
 0x72b   :  { %3409 = vtanh.f32 %v2558_v43 }
 0x72c   :  { %3411 = vtanh.f32 %v2552_v50  ;;  %v2900_v50 = vpop.permute.xlu1 %2899 }
 0x72d   :  { %3413 = vtanh.f32 %v2563_v46  ;;  %vm2901_vm0 = vcmp.eq.s32.totalorder %v2900_v50, 1 }
 0x734   :  { %v3408_v8 = vpop.eup %3407 }
 0x735   :  { %v3410_v17 = vpop.eup %3409  ;;  %v2556_v18 = vmul.f32 0.5, %v3408_v8 }
 0x736   :  { %v2560_v19 = vmul.f32 0.5, %v3410_v17  ;;  %v3412_v35 = vpop.eup %3411 }
 0x737   :  { %v2557_v20 = vadd.f32 0.5, %v2556_v18  ;;  %v3414_v40 = vpop.eup %3413 }
 0x738   :  { %v2561_v53 = vadd.f32 0.5, %v2560_v19  ;;  %v2565_v42 = vmul.f32 0.5, %v3414_v40 }
 0x739   :  { %v2569_v39 = vmul.f32 %v3412_v35, %v2557_v20 }
 0x73a   :  { %v2568_v10 = vmul.f32 %v2561_v53, %v4151_v29  ;;  %v2566_v16 = vadd.f32 0.5, %v2565_v42 }
 0x73c   :  { %v2570_v41 = vadd.f32 %v2569_v39, %v2568_v10 }
 0x73e   :  { %3415 = vtanh.f32 %v2570_v41 }
 0x748   :  { %v3416_v45 = vpop.eup %3415 }
 0x749   :  { %v2572_v47 = vmul.f32 %v3416_v45, %v2566_v16 }
 0x74b   :  { %v2583_v9 = vsel %vm2582_vm15, %v2572_v47, 0.0  ;;  %v2594_v56 = vpack.c.bf16 %v2572_v47, %v2572_v47 }
 0x74c   :  { %2585 = vst [vmem:[#allocation13 + $0x30] sm:$0xff] %v2583_v9 }
 0x74d   :  { %2820 = vmatmul.mubr.bf16.vlgmr.msra.gmra.mrb[44].mxu0 %v2594_v56  ;;  %2861 = vmatmul.mubr.bf16.vlgmr.msra.gmra.mrb[44].mxu1 %v2594_v56 }
 0x820   :  { %v2821_v55 = vpop.f32.mrb[44].mxu0  ;;  %v2862_v57 = vpop.f32.mrb[44].mxu1 }
 0x821   :  { %v2869_v21 = vadd.f32 %v2821_v55, %v4249_v59  ;;  %v2871_v23 = vadd.f32 %v2862_v57, %v4250_v22  ;;  %v2823_v24 = vpop.f32.mrb[45].mxu0  ;;  %v2864_v25 = vpop.f32.mrb[45].mxu1 }
 0x822   :  { %v2870_v29 = vadd.f32 %v2823_v24, %v4251_v26  ;;  %v2872_v31 = vadd.f32 %v2864_v25, %v4252_v30  ;;  %v2825_v32 = vpop.f32.mrb[46].mxu0  ;;  %v2866_v33 = vpop.f32.mrb[46].mxu1 }
 0x823   :  { %v2873_v34 = vmul.f32 0.5, %v2869_v21  ;;  %v2826_v36 = vpop.f32.mrb[47].mxu0  ;;  %v2867_v37 = vpop.f32.mrb[47].mxu1 }
 0x824   :  { %v2877_v12 = vmul.f32 0.5, %v2870_v29  ;;  %v2882_v28 = vmul.f32 0.5, %v2872_v31 }
 0x825   :  { %3417 = vtanh.f32 %v2873_v34 }
 0x826   :  { %3419 = vtanh.f32 %v2877_v12 }
 0x827   :  { %3421 = vtanh.f32 %v2871_v23 }
 0x828   :  { %3423 = vtanh.f32 %v2882_v28 }
 0x82f   :  { %v3418_v13 = vpop.eup %3417 }
 0x830   :  { %v3420_v14 = vpop.eup %3419  ;;  %v2875_v15 = vmul.f32 0.5, %v3418_v13 }
 0x831   :  { %v2879_v52 = vmul.f32 0.5, %v3420_v14  ;;  %v3422_v58 = vpop.eup %3421 }
 0x832   :  { %v2876_v63 = vadd.f32 0.5, %v2875_v15  ;;  %v3424_v1 = vpop.eup %3423 }
 0x833   :  { %v2880_v38 = vadd.f32 0.5, %v2879_v52  ;;  %v2884_v4 = vmul.f32 0.5, %v3424_v1 }
 0x834   :  { %v2888_v60 = vmul.f32 %v3422_v58, %v2876_v63 }
 0x835   :  { %v2887_v61 = vmul.f32 %v2880_v38, %v2570_v41  ;;  %v2885_v3 = vadd.f32 0.5, %v2884_v4 }
 0x837   :  { %v2889_v62 = vadd.f32 %v2888_v60, %v2887_v61 }
 0x839   :  { %3425 = vtanh.f32 %v2889_v62  ;;  %2892 = vst [vmem:[#allocation4] sm:$0xff] %v2889_v62 }
 0x843   :  { %v3426_v11 = vpop.eup %3425 }
 0x844   :  { %v2891_v6 = vmul.f32 %v3426_v11, %v2885_v3 }
 0x846   :  { %2893 = vst [vmem:[#allocation3] sm:$0xff] %v2891_v6  ;;  %v2902_v2 = vsel %vm2901_vm0, %v2891_v6, 0.0 }
 0x847   :  { %2904 = vst [vmem:[#allocation13 + $0x38] sm:$0xff] %v2902_v2 }
 0x848 PF:  { %s3532_s5 = smov [#allocation13]  }
 0x849   :  { %s2910_s18 = sshll.u32 %s3532_s5, 4  ;;  %s2911_s18 = int_to_ptr.vmem [resolvable:$true] %s2910_s18 }
 0x84a   :  { %s3494_s19 = scalar_lea.vmem %s2911_s18, 1024  ;;  %p3499_p13 = scmp.lt.s32.totalorder %s2911_s18, %s2911_s18 }
 0x84b   :  { %p3495_p12 = scmp.ne.s32.totalorder %s2911_s18, %s3494_s19  ;;  %p3500_p0 = scmp.lt.s32.totalorder %s3494_s19, %s3494_s19 }
 0x84d   :  { %p3501_p1 = por %p3500_p0, %p3499_p13 }
 0x84f   :  { %p3502_p2 = pnand %p3501_p1, %p3495_p12 }
 0x851   :  { %3505 = shalt.err (!%p3502_p2)
}
 0x852   :  { %s3506_s21 = scalar_lea.hbm %s4209_s6, 1024 }
 0x853   :  { %p3507_p3 = scmp.ne.s32.totalorder %s4209_s6, %s3506_s21  ;;  %p3510_p4 = scmp.lt.u32.totalorder %s3506_s21, %s4209_s6 }
 0x855   :  { %p3512_p5 = pnand %p3510_p4, %p3507_p3 }
 0x857   :  { %3515 = shalt.err (!%p3512_p5)
}
 0x858   :  { %s3533_s26 = smov 128   ;;  %s3534_s27 = smov 8  }
 0x859   :  { %2916 = dma.vmem_to_hbm [thread:$0]  %s2911_s18, 1024, %s4209_s6, [#allocation9], %s3533_s26, %s3533_s26, %s3534_s27  }
 0x85a   :  { %3520 = dma.done.wait [#allocation9], 1024  }
 0x85b   :  { %3521 = vsyncadd [#allocation9], 4294966272 }
 0x85c   :  { %2920 = vsyncpa [#allocation8], 1 }
 0x85d   :  { %2921 = vsyncpa [#allocation11], 1 }
 0x85e   :  { %2922 = vsyncpa [#allocation9], 1 }

</bundles_post_ra>
